<compile_context>
chip_gen: v6e
topology: v6e:2x2x1
jax: 0.10.0
libtpu: 0.0.40
codegen_flags: <defaults>
</compile_context>

<pallas_src>
import jax
import jax.numpy as jnp
from jax import lax
from jax.experimental import pallas as pl
from jax.experimental.pallas import tpu as pltpu

MATMUL_DTYPE = jnp.bfloat16   # MXU operand dtype; accumulation is always f32


def _round_up(x, m):
    return (x + m - 1) // m * m


def _make_chebnet_kernel(*, k, num_layers, do_train, re_norm, feat_widths,
                         block_b, n_p, o_p, out_cols_p):
    bn = block_b * n_p
    f32 = jnp.float32

    def kernel(*refs):
        adj_ref, dr_ref, dc_ref, x_ref = refs[:4]
        o_ref, xt_ref = refs[-2], refs[-1]
        prefs = refs[4:-2]

        # One-time normalization fold (f32 scale, single bf16 rounding):
        #   adj_norm = -re_norm * D^-1/2 A D^-1/2
        # dr holds -re_norm * d_i (row scale), dc holds d_j (column scale).
        dr = dr_ref[...]                                        # (bb, Np, 1)  f32
        dc = dc_ref[...]                                        # (bb, 1, Np)  f32
        adj_norm = ((adj_ref[...].astype(f32) * dr) * dc).astype(MATMUL_DTYPE)

        def lap(feat_mm):
            # -re_norm * unnLap(feat) = adj_norm @ feat (per graph), f32 accumulation.
            return jnp.einsum("bij,bjf->bif", adj_norm, feat_mm,
                              preferred_element_type=f32)

        h = x_ref[...]                                          # (bb, Np, f0) f32
        pi = 0
        for layer in range(num_layers):
            w_ref, b_ref = prefs[pi], prefs[pi + 1]
            pi += 2
            fc = feat_widths[layer]
            # TODO(synk): nn.Dropout(feat_drop) omitted (default p=0.0 -> identity).
            # Chebyshev basis written straight into the lane-sliced bf16 scratch;
            # only two f32 recurrence carries stay live (no concat copy).
            tx0 = h
            tx0_mm = tx0.astype(MATMUL_DTYPE)
            xt_ref[:, 0:fc] = tx0_mm.reshape(bn, fc)
            if k > 1:
                tx1 = lap(tx0_mm) + (re_norm - 1.0) * tx0
                tx1_mm = tx1.astype(MATMUL_DTYPE)
                xt_ref[:, fc:2 * fc] = tx1_mm.reshape(bn, fc)
                for j in range(2, k):
                    tx2 = 2.0 * (lap(tx1_mm) + (re_norm - 1.0) * tx1) - tx0
                    tx2_mm = tx2.astype(MATMUL_DTYPE)
                    xt_ref[:, j * fc:(j + 1) * fc] = tx2_mm.reshape(bn, fc)
                    tx0, tx1, tx1_mm = tx1, tx2, tx2_mm
            # Fuse the k per-order linears into ONE matmul on the concatenated basis.
            xt = xt_ref[:, 0:k * fc]                            # (bn, k*fc) bf16
            hv = jnp.dot(xt, w_ref[...], preferred_element_type=f32) + b_ref[...]
            hv = jnp.maximum(hv, 0.0)                           # activation=F.relu
            h = hv.reshape(block_b, n_p, o_p)
        if do_train:
            wp_ref, bp_ref = prefs[pi], prefs[pi + 1]
            hv = jnp.dot(h.reshape(bn, o_p).astype(MATMUL_DTYPE), wp_ref[...],
                         preferred_element_type=f32) + bp_ref[...]
            h = hv.reshape(block_b, n_p, out_cols_p)
        o_ref[...] = h.astype(o_ref.dtype)

    return kernel


def chebnet_forward(adj, x, params, *, k, lambda_max=2.0, do_train=False):
    """adj: (B, N, N) f32 (adj[i, j] = 1 iff edge j -> i), x: (B, N, in_feats) f32."""
    # TODO(synk): DGL computes lambda_max via a sparse eigensolve when not given;
    # we use the standard fallback 2.0 (pass a precomputed lambda_max to match).
    B, N, f_in = x.shape
    layers = params["layers"]
    out_feats = layers[0]["W"].shape[-1]
    re_norm = float(2.0 / lambda_max)

    # Node dim padded to 128 so the adjacency matmul is full-lane / full-MXU-tile;
    # feature dims padded to 128 lanes so loads/stores are lane-dense.
    n_p = _round_up(N, 128)
    f_p0 = _round_up(f_in, 128)
    o_p = _round_up(out_feats, 128)

    # Small-graph batching: pack several graphs per grid step (fill the MXU M dim,
    # amortize per-step pipeline overhead) but keep >=2 grid steps when B >= 2 so
    # v7x can shard the "parallel" axis across both TensorCores.
    block_b = max(1, 256 // n_p)
    if B >= 2:
        block_b = min(block_b, (B + 1) // 2)
    block_b = max(1, min(block_b, B))
    B_pad = _round_up(B, block_b)
    num_blocks = B_pad // block_b

    adj_f32 = adj.astype(jnp.float32)
    # Degree normalization in f32 in the wrapper (never from bf16 sums), shipped as
    # two tiny vectors; the O(N^2) adjacency travels in bf16 (0/1 -> lossless).
    deg = jnp.sum(adj_f32, axis=-1, keepdims=True)              # (B, N, 1) in-degree
    d_invsqrt = lax.rsqrt(jnp.maximum(deg, 1.0))                # clamp(min=1)^-1/2
    d_row = (-re_norm) * d_invsqrt                              # (B, N, 1)
    d_col = jnp.transpose(d_invsqrt, (0, 2, 1))                 # (B, 1, N)

    def pad_to(a, shp):
        return jnp.pad(a, tuple((0, t - s) for s, t in zip(a.shape, shp)))

    adj_p = pad_to(adj_f32, (B_pad, n_p, n_p)).astype(MATMUL_DTYPE)
    dr_p = pad_to(d_row, (B_pad, n_p, 1))
    dc_p = pad_to(d_col, (B_pad, 1, n_p))
    x_p = pad_to(x.astype(jnp.float32), (B_pad, n_p, f_p0))

    flat_args = [adj_p, dr_p, dc_p, x_p]
    in_specs = [
        pl.BlockSpec((block_b, n_p, n_p), lambda b: (b, 0, 0)),
        pl.BlockSpec((block_b, n_p, 1), lambda b: (b, 0, 0)),
        pl.BlockSpec((block_b, 1, n_p), lambda b: (b, 0, 0)),
        pl.BlockSpec((block_b, n_p, f_p0), lambda b: (b, 0, 0)),
    ]

    feat_widths = []
    fin_p = f_p0
    for layer in layers:
        W, bvec = layer["W"], layer["b"]              # W: (k, fin, out), b: (out,)
        kk, fin, fo = W.shape
        W_pad = jnp.pad(W.astype(jnp.float32),
                        ((0, 0), (0, fin_p - fin), (0, o_p - fo)))
        W_pad = W_pad.reshape(kk * fin_p, o_p).astype(MATMUL_DTYPE)
        b_pad = jnp.pad(bvec.reshape(1, fo).astype(jnp.float32),
                        ((0, 0), (0, o_p - fo)))
        flat_args += [W_pad, b_pad]
        in_specs += [pl.BlockSpec(W_pad.shape, lambda b: (0, 0)),
                     pl.BlockSpec(b_pad.shape, lambda b: (0, 0))]
        feat_widths.append(fin_p)
        fin_p = o_p

    if do_train:
        Wp, bp = params["predict"]["W"], params["predict"]["b"]   # (out,1), (1,)
        p_p = _round_up(Wp.shape[1], 128)
        Wp_pad = jnp.pad(Wp.astype(jnp.float32),
                         ((0, o_p - Wp.shape[0]), (0, p_p - Wp.shape[1])))
        Wp_pad = Wp_pad.astype(MATMUL_DTYPE)
        bp_pad = jnp.pad(bp.reshape(1, -1).astype(jnp.float32),
                         ((0, 0), (0, p_p - bp.shape[0])))
        flat_args += [Wp_pad, bp_pad]
        in_specs += [pl.BlockSpec(Wp_pad.shape, lambda b: (0, 0)),
                     pl.BlockSpec(bp_pad.shape, lambda b: (0, 0))]
        out_cols_p, out_cols = p_p, Wp.shape[1]
    else:
        out_cols_p, out_cols = o_p, out_feats

    f_max = max(feat_widths)
    kernel = _make_chebnet_kernel(
        k=k, num_layers=len(layers), do_train=do_train, re_norm=re_norm,
        feat_widths=tuple(feat_widths), block_b=block_b, n_p=n_p, o_p=o_p,
        out_cols_p=out_cols_p)

    # Explicit VMEM budget (v5e's default scoped limit is only 16 MiB; v6e/v7x 32 MiB).
    w_bytes = sum(int(a.size) * a.dtype.itemsize for a in flat_args[4:])
    est = (2 * block_b * n_p * n_p * 2            # adj bf16, double buffered
           + 2 * block_b * n_p * f_p0 * 4         # x f32, double buffered
           + 2 * block_b * n_p * out_cols_p * 4   # out f32, double buffered
           + 2 * w_bytes                          # weights / biases
           + block_b * n_p * k * f_max * 2        # xt scratch (bf16)
           + block_b * n_p * n_p * 2              # adj_norm live temp
           + 4 * block_b * n_p * max(f_max, o_p) * 4)   # recurrence carries / h
    vmem_limit = int(min(max(est * 3 // 2, 32 * 1024 * 1024), 128 * 1024 * 1024))
    # TODO(synk): for very large N (full-graph block beyond a few tens of MiB,
    # especially on v7x's 64 MiB VMEM) the adjacency should be kept in
    # memory_space=pl.ANY and streamed in row tiles via pltpu.emit_pipeline; the
    # monolithic full-graph block here targets small/medium graphs.

    out = pl.pallas_call(
        kernel,
        out_shape=jax.ShapeDtypeStruct((B_pad, n_p, out_cols_p), jnp.float32),
        grid=(num_blocks,),
        in_specs=in_specs,
        out_specs=pl.BlockSpec((block_b, n_p, out_cols_p), lambda b: (b, 0, 0)),
        scratch_shapes=[pltpu.VMEM((block_b * n_p, k * f_max), MATMUL_DTYPE)],
        compiler_params=pltpu.CompilerParams(
            dimension_semantics=("parallel",),
            vmem_limit_bytes=vmem_limit),
    )(*flat_args)
    return out[:B, :N, :out_cols]


def chebnet_reference(adj, x, params, *, k, lambda_max=2.0, do_train=False):
    """Pure-JAX f32 reference with identical math (for self-check)."""
    re_norm = 2.0 / lambda_max
    deg = jnp.sum(adj, axis=-1, keepdims=True)
    dinv = 1.0 / jnp.sqrt(jnp.maximum(deg, 1.0))

    def unnlap(f):
        return dinv * jnp.einsum("bij,bjf->bif", adj, f * dinv)

    h = x
    for layer in params["layers"]:
        W, b = layer["W"], layer["b"]
        tx0 = h
        txs = [tx0]
        if k > 1:
            tx1 = -re_norm * unnlap(tx0) + tx0 * (re_norm - 1.0)
            txs.append(tx1)
            for _ in range(2, k):
                tx2 = 2.0 * (-re_norm * unnlap(tx1) + tx1 * (re_norm - 1.0)) - tx0
                txs.append(tx2)
                tx0, tx1 = tx1, tx2
        rst = sum(jnp.einsum("bnf,fo->bno", txs[j], W[j]) for j in range(k)) + b
        h = jnp.maximum(rst, 0.0)
    if do_train:
        h = jnp.einsum("bno,op->bnp", h, params["predict"]["W"]) \
            + params["predict"]["b"]
    return h


def init_params(key, in_feats, out_feats, num_layers, k):
    layers = []
    fin = in_feats
    keys = jax.random.split(key, num_layers + 1)
    for l in range(num_layers):
        kw, kb = jax.random.split(keys[l])
        bound = float(k * fin) ** -0.5      # PyTorch Linear(k*fin, out) default scale
        W = jax.random.uniform(kw, (k, fin, out_feats), jnp.float32, -bound, bound)
        b = jax.random.uniform(kb, (out_feats,), jnp.float32, -bound, bound)
        layers.append({"W": W, "b": b})
        fin = out_feats
    kw, kb = jax.random.split(keys[-1])
    bound = float(out_feats) ** -0.5
    Wp = jax.random.uniform(kw, (out_feats, 1), jnp.float32, -bound, bound)
    bp = jax.random.uniform(kb, (1,), jnp.float32, -bound, bound)
    return {"layers": layers, "predict": {"W": Wp, "b": bp}}


if __name__ == "__main__":
    B, N = 2, 64
    in_feats, out_feats, num_layers, k = 16, 32, 2, 3

    key = jax.random.PRNGKey(0)
    k_adj, k_x, k_p = jax.random.split(key, 3)

    # Random directed graphs, no self loops; adj[b, i, j] = edge j -> i.
    adj = (jax.random.uniform(k_adj, (B, N, N)) < 0.15).astype(jnp.float32)
    adj = adj * (1.0 - jnp.eye(N, dtype=jnp.float32))

    x = jax.random.normal(k_x, (B, N, in_feats), jnp.float32)
    params = init_params(k_p, in_feats, out_feats, num_layers, k)

    # do_train=False (module default): returns h after the ChebConv stack.
    h = chebnet_forward(adj, x, params, k=k, do_train=False)
    # do_train=True: additionally applies predict = Linear(out_feats, 1).
    logits = chebnet_forward(adj, x, params, k=k, do_train=True)
    jax.block_until_ready((h, logits))

    assert h.shape == (B, N, out_feats)
    assert logits.shape == (B, N, 1)

    # Self-check vs. pure-JAX f32 reference (loose tol: bf16 MXU operands).
    h_ref = chebnet_reference(adj, x, params, k=k, do_train=False)
    logits_ref = chebnet_reference(adj, x, params, k=k, do_train=True)
    assert float(jnp.max(jnp.abs(h - h_ref))) < 5e-2
    assert float(jnp.max(jnp.abs(logits - logits_ref))) < 5e-2

    print("KERNEL_OK")
</pallas_src>

<mosaic_0001>
module attributes {stable_mosaic.version = 11 : i64} {
  func.func @kernel(%arg0: i32, %arg1: memref<1x128x128xbf16, #tpu.memory_space<vmem>>, %arg2: memref<1x128x1xf32, #tpu.memory_space<vmem>>, %arg3: memref<1x1x128xf32, #tpu.memory_space<vmem>>, %arg4: memref<1x128x128xf32, #tpu.memory_space<vmem>>, %arg5: memref<384x128xbf16, #tpu.memory_space<vmem>>, %arg6: memref<1x128xf32, #tpu.memory_space<vmem>>, %arg7: memref<384x128xbf16, #tpu.memory_space<vmem>>, %arg8: memref<1x128xf32, #tpu.memory_space<vmem>>, %arg9: memref<1x128x128xf32, #tpu.memory_space<vmem>>, %arg10: memref<128x384xbf16, #tpu.memory_space<vmem>>) attributes {dimension_semantics = [#tpu.dimension_semantics<parallel>], iteration_bounds = array<i64: 2>, scalar_prefetch = 0 : i64, scratch_operands = 1 : i64, tpu.core_type = #tpu.core_type<tc>, window_params = [{transform_indices = @transform_0, window_bounds = array<i64: 1, 128, 128>}, {transform_indices = @transform_1, window_bounds = array<i64: 1, 128, 1>}, {transform_indices = @transform_2, window_bounds = array<i64: 1, 1, 128>}, {transform_indices = @transform_3, window_bounds = array<i64: 1, 128, 128>}, {pipeline_mode = #tpu.pipeline_mode<synchronous>, transform_indices = @transform_4, window_bounds = array<i64: 384, 128>}, {pipeline_mode = #tpu.pipeline_mode<synchronous>, transform_indices = @transform_5, window_bounds = array<i64: 1, 128>}, {pipeline_mode = #tpu.pipeline_mode<synchronous>, transform_indices = @transform_6, window_bounds = array<i64: 384, 128>}, {pipeline_mode = #tpu.pipeline_mode<synchronous>, transform_indices = @transform_7, window_bounds = array<i64: 1, 128>}, {transform_indices = @transform_8, window_bounds = array<i64: 1, 128, 128>}]} {
    %c0 = arith.constant 0 : index
    %c0_0 = arith.constant 0 : index
    %c0_1 = arith.constant 0 : index
    %0 = vector.load %arg2[%c0, %c0_0, %c0_1] : memref<1x128x1xf32, #tpu.memory_space<vmem>>, vector<1x128x1xf32>
    %c0_2 = arith.constant 0 : index
    %c0_3 = arith.constant 0 : index
    %c0_4 = arith.constant 0 : index
    %1 = vector.load %arg3[%c0_2, %c0_3, %c0_4] : memref<1x1x128xf32, #tpu.memory_space<vmem>>, vector<1x1x128xf32>
    %c0_5 = arith.constant 0 : index
    %c0_6 = arith.constant 0 : index
    %c0_7 = arith.constant 0 : index
    %2 = vector.load %arg1[%c0_5, %c0_6, %c0_7] : memref<1x128x128xbf16, #tpu.memory_space<vmem>>, vector<1x128x128xbf16>
    %3 = arith.extf %2 : vector<1x128x128xbf16> to vector<1x128x128xf32>
    %4 = vector.broadcast %0 : vector<1x128x1xf32> to vector<1x128x128xf32>
    %5 = arith.mulf %3, %4 : vector<1x128x128xf32>
    %6 = vector.broadcast %1 : vector<1x1x128xf32> to vector<1x128x128xf32>
    %7 = arith.mulf %5, %6 : vector<1x128x128xf32>
    %8 = arith.truncf %7 : vector<1x128x128xf32> to vector<1x128x128xbf16>
    %c0_8 = arith.constant 0 : index
    %c0_9 = arith.constant 0 : index
    %c0_10 = arith.constant 0 : index
    %9 = vector.load %arg4[%c0_8, %c0_9, %c0_10] : memref<1x128x128xf32, #tpu.memory_space<vmem>>, vector<1x128x128xf32>
    %10 = arith.truncf %9 : vector<1x128x128xf32> to vector<1x128x128xbf16>
    %11 = vector.shape_cast %10 : vector<1x128x128xbf16> to vector<128x128xbf16>
    %c0_11 = arith.constant 0 : index
    %c0_12 = arith.constant 0 : index
    %12 = vector.load %arg10[%c0_11, %c0_12] : memref<128x384xbf16, #tpu.memory_space<vmem>>, vector<128x128xbf16>
    tpu.vector_store %arg10[%c0_11, %c0_12], %11 {strides = array<i32>} : memref<128x384xbf16, #tpu.memory_space<vmem>>, vector<128x128xbf16>,
    "tpu.trace_start"() <{level = 10 : i32, message = "bij,bjf->bif"}> : () -> ()
    %cst = arith.constant dense<0.000000e+00> : vector<1x128x128xf32>
    %13 = tpu.matmul %8, %10, %cst {dimension_numbers = #tpu.dot_dimension_numbers<[2], [1], [1], [2], [0, 0, 0, 1, 1, 2], [0], [0]>} : vector<1x128x128xbf16>, vector<1x128x128xbf16>, vector<1x128x128xf32> -> vector<1x128x128xf32>
    "tpu.trace_stop"() : () -> ()
    %cst_13 = arith.constant 0.000000e+00 : f32
    %14 = vector.broadcast %cst_13 : f32 to vector<1x128x128xf32>
    %15 = arith.mulf %14, %9 : vector<1x128x128xf32>
    %16 = arith.addf %13, %15 : vector<1x128x128xf32>
    %17 = arith.truncf %16 : vector<1x128x128xf32> to vector<1x128x128xbf16>
    %18 = vector.shape_cast %17 : vector<1x128x128xbf16> to vector<128x128xbf16>
    %c0_14 = arith.constant 0 : index
    %c128 = arith.constant 128 : index
    %19 = vector.load %arg10[%c0_14, %c128] : memref<128x384xbf16, #tpu.memory_space<vmem>>, vector<128x128xbf16>
    tpu.vector_store %arg10[%c0_14, %c128], %18 {strides = array<i32>} : memref<128x384xbf16, #tpu.memory_space<vmem>>, vector<128x128xbf16>,
    "tpu.trace_start"() <{level = 10 : i32, message = "bij,bjf->bif"}> : () -> ()
    %cst_15 = arith.constant dense<0.000000e+00> : vector<1x128x128xf32>
    %20 = tpu.matmul %8, %17, %cst_15 {dimension_numbers = #tpu.dot_dimension_numbers<[2], [1], [1], [2], [0, 0, 0, 1, 1, 2], [0], [0]>} : vector<1x128x128xbf16>, vector<1x128x128xbf16>, vector<1x128x128xf32> -> vector<1x128x128xf32>
    "tpu.trace_stop"() : () -> ()
    %cst_16 = arith.constant 0.000000e+00 : f32
    %21 = vector.broadcast %cst_16 : f32 to vector<1x128x128xf32>
    %22 = arith.mulf %21, %16 : vector<1x128x128xf32>
    %23 = arith.addf %20, %22 : vector<1x128x128xf32>
    %cst_17 = arith.constant 2.000000e+00 : f32
    %24 = vector.broadcast %cst_17 : f32 to vector<1x128x128xf32>
    %25 = arith.mulf %24, %23 : vector<1x128x128xf32>
    %26 = arith.subf %25, %9 : vector<1x128x128xf32>
    %27 = arith.truncf %26 : vector<1x128x128xf32> to vector<1x128x128xbf16>
    %28 = vector.shape_cast %27 : vector<1x128x128xbf16> to vector<128x128xbf16>
    %c0_18 = arith.constant 0 : index
    %c256 = arith.constant 256 : index
    %29 = vector.load %arg10[%c0_18, %c256] : memref<128x384xbf16, #tpu.memory_space<vmem>>, vector<128x128xbf16>
    tpu.vector_store %arg10[%c0_18, %c256], %28 {strides = array<i32>} : memref<128x384xbf16, #tpu.memory_space<vmem>>, vector<128x128xbf16>,
    %c0_19 = arith.constant 0 : index
    %c0_20 = arith.constant 0 : index
    %30 = vector.load %arg10[%c0_19, %c0_20] : memref<128x384xbf16, #tpu.memory_space<vmem>>, vector<128x384xbf16>
    %c0_21 = arith.constant 0 : index
    %c0_22 = arith.constant 0 : index
    %31 = vector.load %arg5[%c0_21, %c0_22] : memref<384x128xbf16, #tpu.memory_space<vmem>>, vector<384x128xbf16>
    %cst_23 = arith.constant dense<0.000000e+00> : vector<128x128xf32>
    %32 = tpu.matmul %30, %31, %cst_23 {dimension_numbers = #tpu.dot_dimension_numbers<[1], [0], [0], [1], [0, 0, 1, 1], [], []>} : vector<128x384xbf16>, vector<384x128xbf16>, vector<128x128xf32> -> vector<128x128xf32>
    %c0_24 = arith.constant 0 : index
    %c0_25 = arith.constant 0 : index
    %33 = vector.load %arg6[%c0_24, %c0_25] : memref<1x128xf32, #tpu.memory_space<vmem>>, vector<1x128xf32>
    %34 = vector.broadcast %33 : vector<1x128xf32> to vector<128x128xf32>
    %35 = arith.addf %32, %34 : vector<128x128xf32>
    %cst_26 = arith.constant 0.000000e+00 : f32
    %36 = vector.broadcast %cst_26 : f32 to vector<128x128xf32>
    %37 = arith.maximumf %35, %36 : vector<128x128xf32>
    %38 = vector.shape_cast %37 : vector<128x128xf32> to vector<1x128x128xf32>
    %39 = arith.truncf %38 : vector<1x128x128xf32> to vector<1x128x128xbf16>
    %40 = vector.shape_cast %39 : vector<1x128x128xbf16> to vector<128x128xbf16>
    %c0_27 = arith.constant 0 : index
    %c0_28 = arith.constant 0 : index
    %41 = vector.load %arg10[%c0_27, %c0_28] : memref<128x384xbf16, #tpu.memory_space<vmem>>, vector<128x128xbf16>
    tpu.vector_store %arg10[%c0_27, %c0_28], %40 {strides = array<i32>} : memref<128x384xbf16, #tpu.memory_space<vmem>>, vector<128x128xbf16>,
    "tpu.trace_start"() <{level = 10 : i32, message = "bij,bjf->bif"}> : () -> ()
    %cst_29 = arith.constant dense<0.000000e+00> : vector<1x128x128xf32>
    %42 = tpu.matmul %8, %39, %cst_29 {dimension_numbers = #tpu.dot_dimension_numbers<[2], [1], [1], [2], [0, 0, 0, 1, 1, 2], [0], [0]>} : vector<1x128x128xbf16>, vector<1x128x128xbf16>, vector<1x128x128xf32> -> vector<1x128x128xf32>
    "tpu.trace_stop"() : () -> ()
    %cst_30 = arith.constant 0.000000e+00 : f32
    %43 = vector.broadcast %cst_30 : f32 to vector<1x128x128xf32>
    %44 = arith.mulf %43, %38 : vector<1x128x128xf32>
    %45 = arith.addf %42, %44 : vector<1x128x128xf32>
    %46 = arith.truncf %45 : vector<1x128x128xf32> to vector<1x128x128xbf16>
    %47 = vector.shape_cast %46 : vector<1x128x128xbf16> to vector<128x128xbf16>
    %c0_31 = arith.constant 0 : index
    %c128_32 = arith.constant 128 : index
    %48 = vector.load %arg10[%c0_31, %c128_32] : memref<128x384xbf16, #tpu.memory_space<vmem>>, vector<128x128xbf16>
    tpu.vector_store %arg10[%c0_31, %c128_32], %47 {strides = array<i32>} : memref<128x384xbf16, #tpu.memory_space<vmem>>, vector<128x128xbf16>,
    "tpu.trace_start"() <{level = 10 : i32, message = "bij,bjf->bif"}> : () -> ()
    %cst_33 = arith.constant dense<0.000000e+00> : vector<1x128x128xf32>
    %49 = tpu.matmul %8, %46, %cst_33 {dimension_numbers = #tpu.dot_dimension_numbers<[2], [1], [1], [2], [0, 0, 0, 1, 1, 2], [0], [0]>} : vector<1x128x128xbf16>, vector<1x128x128xbf16>, vector<1x128x128xf32> -> vector<1x128x128xf32>
    "tpu.trace_stop"() : () -> ()
    %cst_34 = arith.constant 0.000000e+00 : f32
    %50 = vector.broadcast %cst_34 : f32 to vector<1x128x128xf32>
    %51 = arith.mulf %50, %45 : vector<1x128x128xf32>
    %52 = arith.addf %49, %51 : vector<1x128x128xf32>
    %cst_35 = arith.constant 2.000000e+00 : f32
    %53 = vector.broadcast %cst_35 : f32 to vector<1x128x128xf32>
    %54 = arith.mulf %53, %52 : vector<1x128x128xf32>
    %55 = arith.subf %54, %38 : vector<1x128x128xf32>
    %56 = arith.truncf %55 : vector<1x128x128xf32> to vector<1x128x128xbf16>
    %57 = vector.shape_cast %56 : vector<1x128x128xbf16> to vector<128x128xbf16>
    %c0_36 = arith.constant 0 : index
    %c256_37 = arith.constant 256 : index
    %58 = vector.load %arg10[%c0_36, %c256_37] : memref<128x384xbf16, #tpu.memory_space<vmem>>, vector<128x128xbf16>
    tpu.vector_store %arg10[%c0_36, %c256_37], %57 {strides = array<i32>} : memref<128x384xbf16, #tpu.memory_space<vmem>>, vector<128x128xbf16>,
    %c0_38 = arith.constant 0 : index
    %c0_39 = arith.constant 0 : index
    %59 = vector.load %arg10[%c0_38, %c0_39] : memref<128x384xbf16, #tpu.memory_space<vmem>>, vector<128x384xbf16>
    %c0_40 = arith.constant 0 : index
    %c0_41 = arith.constant 0 : index
    %60 = vector.load %arg7[%c0_40, %c0_41] : memref<384x128xbf16, #tpu.memory_space<vmem>>, vector<384x128xbf16>
    %cst_42 = arith.constant dense<0.000000e+00> : vector<128x128xf32>
    %61 = tpu.matmul %59, %60, %cst_42 {dimension_numbers = #tpu.dot_dimension_numbers<[1], [0], [0], [1], [0, 0, 1, 1], [], []>} : vector<128x384xbf16>, vector<384x128xbf16>, vector<128x128xf32> -> vector<128x128xf32>
    %c0_43 = arith.constant 0 : index
    %c0_44 = arith.constant 0 : index
    %62 = vector.load %arg8[%c0_43, %c0_44] : memref<1x128xf32, #tpu.memory_space<vmem>>, vector<1x128xf32>
    %63 = vector.broadcast %62 : vector<1x128xf32> to vector<128x128xf32>
    %64 = arith.addf %61, %63 : vector<128x128xf32>
    %cst_45 = arith.constant 0.000000e+00 : f32
    %65 = vector.broadcast %cst_45 : f32 to vector<128x128xf32>
    %66 = arith.maximumf %64, %65 : vector<128x128xf32>
    %67 = vector.shape_cast %66 : vector<128x128xf32> to vector<1x128x128xf32>
    %c0_46 = arith.constant 0 : index
    %c0_47 = arith.constant 0 : index
    %c0_48 = arith.constant 0 : index
    %68 = vector.load %arg9[%c0_46, %c0_47, %c0_48] : memref<1x128x128xf32, #tpu.memory_space<vmem>>, vector<1x128x128xf32>
    tpu.vector_store %arg9[%c0_46, %c0_47, %c0_48], %67 {strides = array<i32>} : memref<1x128x128xf32, #tpu.memory_space<vmem>>, vector<1x128x128xf32>,
    return
  }
  func.func @transform_0(%arg0: i32) -> (i32, i32, i32) {
    %c0_i32 = arith.constant 0 : i32
    %c0_i32_0 = arith.constant 0 : i32
    %c0_i32_1 = arith.constant 0 : i32
    return %arg0, %c0_i32, %c0_i32_0 : i32, i32, i32
  }
  func.func @transform_1(%arg0: i32) -> (i32, i32, i32) {
    %c0_i32 = arith.constant 0 : i32
    %c0_i32_0 = arith.constant 0 : i32
    %c0_i32_1 = arith.constant 0 : i32
    return %arg0, %c0_i32, %c0_i32_0 : i32, i32, i32
  }
  func.func @transform_2(%arg0: i32) -> (i32, i32, i32) {
    %c0_i32 = arith.constant 0 : i32
    %c0_i32_0 = arith.constant 0 : i32
    %c0_i32_1 = arith.constant 0 : i32
    return %arg0, %c0_i32, %c0_i32_0 : i32, i32, i32
  }
  func.func @transform_3(%arg0: i32) -> (i32, i32, i32) {
    %c0_i32 = arith.constant 0 : i32
    %c0_i32_0 = arith.constant 0 : i32
    %c0_i32_1 = arith.constant 0 : i32
    return %arg0, %c0_i32, %c0_i32_0 : i32, i32, i32
  }
  func.func @transform_4(%arg0: i32) -> (i32, i32) {
    %c0_i32 = arith.constant 0 : i32
    %c0_i32_0 = arith.constant 0 : i32
    %c0_i32_1 = arith.constant 0 : i32
    return %c0_i32, %c0_i32_0 : i32, i32
  }
  func.func @transform_5(%arg0: i32) -> (i32, i32) {
    %c0_i32 = arith.constant 0 : i32
    %c0_i32_0 = arith.constant 0 : i32
    %c0_i32_1 = arith.constant 0 : i32
    return %c0_i32, %c0_i32_0 : i32, i32
  }
  func.func @transform_6(%arg0: i32) -> (i32, i32) {
    %c0_i32 = arith.constant 0 : i32
    %c0_i32_0 = arith.constant 0 : i32
    %c0_i32_1 = arith.constant 0 : i32
    return %c0_i32, %c0_i32_0 : i32, i32
  }
  func.func @transform_7(%arg0: i32) -> (i32, i32) {
    %c0_i32 = arith.constant 0 : i32
    %c0_i32_0 = arith.constant 0 : i32
    %c0_i32_1 = arith.constant 0 : i32
    return %c0_i32, %c0_i32_0 : i32, i32
  }
  func.func @transform_8(%arg0: i32) -> (i32, i32, i32) {
    %c0_i32 = arith.constant 0 : i32
    %c0_i32_0 = arith.constant 0 : i32
    %c0_i32_1 = arith.constant 0 : i32
    return %arg0, %c0_i32, %c0_i32_0 : i32, i32, i32
  }
}

</mosaic_0001>

<bundles_post_ra>
// kernel: tpu_custom_call.1
= control target key start
LH: loop header
LB: loop body
LE: loop exit
PB: predicated region body
PF: predicated region fallthrough
CT: control target
= control target key end

     0   :  { %s4900_s0 = inlined_call_operand.hbm [shape: bf16[2,128,128], index: 0, kind: input, shape index: {}]   ;;  %s4901_s1 = inlined_call_operand.vmem [shape: f32[2,128,1], index: 1, kind: input, shape index: {}]   ;;  %s4902_s2 = inlined_call_operand.vmem [shape: f32[2,1,128], index: 2, kind: input, shape index: {}]   ;;  %s4903_s3 = inlined_call_operand.vmem [shape: f32[2,128,128], index: 3, kind: input, shape index: {}]   ;;  %s4904_s4 = inlined_call_operand.hbm [shape: bf16[384,128], index: 4, kind: input, shape index: {}]   ;;  %s4905_s5 = inlined_call_operand.vmem [shape: f32[1,128], index: 5, kind: input, shape index: {}]   ;;  %s4906_s6 = inlined_call_operand.hbm [shape: bf16[384,128], index: 6, kind: input, shape index: {}]   ;;  %s4907_s7 = inlined_call_operand.vmem [shape: f32[1,128], index: 7, kind: input, shape index: {}]   ;;  %s4908_s8 = inlined_call_operand.hbm [shape: f32[2,128,128], index: 8, kind: output, shape index: {}]  }
   0x1   :  { %4915 = sst [smem:[#allocation13_spill]] %s4904_s4 }
   0x2   :  { %4916 = sst [smem:[#allocation14_spill]] %s4906_s6 }
   0x3   :  { %13 = vsyncpa [#allocation4], 0 }
   0x4   :  { %15 = vsyncpa [#allocation4 + $0x1], 0 }
   0x5   :  { %16 = vsyncpa [#allocation7], 0 }
   0x6   :  { %17 = vsyncpa [#allocation5], 0 }
   0x7   :  { %19 = vsyncpa [#allocation5 + $0x1], 0  ;;  %s4062_s27 = smov 0   ;;  %s4064_s28 = smov 0  }
   0x8   :  { %s4066_s29 = smov 0   ;;  %s4068_s30 = smov 0  }
   0x9 LB: > { %s4083_s9 = sadd.s32 4294967295, %s4006_s30   ;;  %s2888_s10 = sadd.s32 4294967294, %s4006_s30   ;;  %s4006_s30 = sphi %s4068_s30, %s4937_s30   ;;  %s4002_s29 = sphi %s4066_s29, %s4936_s29   ;;  %s3998_s28 = sphi %s4064_s28, %s4935_s28   ;;  %s3994_s27 = sphi %s4062_s27, %s4934_s27  }
   0xa   : > { %p45_p0 = scmp.ne.s32.totalorder %s3998_s28, %s3994_s27  ;;  %p4911_p1 = scmp.eq.s32.totalorder %s4083_s9, 0 }
   0xb   : > { %p231_p2 = scmp.eq.s32.totalorder %s4083_s9, 1  ;;  %p237_p3 = scmp.eq.s32.totalorder %s2888_s10, 1 }
   0xc   : > { %p4092_p4 = por %p4911_p1, %p45_p0  ;;  %p2889_p5 = scmp.ge.s32.totalorder %s4006_s30, 1 }
   0xd   : > { %p4097_p6 = por %p237_p3, %p45_p0  ;;  %p244_p7 = scmp.lt.s32.totalorder %s4006_s30, 3 }
   0xe   : > { %s4917_s11 = scalar_select %p4092_p4, 1, 0 }
   0xf   : > { %s4918_s12 = scalar_select %p4097_p6, 1, 0 }
  0x10   : > { %p4102_p8 = pnand %p2889_p5, %p244_p7  ;;  %s4008_s14 = smov [#allocation6]  }
  0x11   : > { %s256_s15 = sshll.u32 %s4008_s14, 4  ;;  %s4009_s17 = smov [#allocation8]   ;;  %s257_s15 = int_to_ptr.vmem [resolvable:$true] %s256_s15 }
  0x12   : > { %s4919_s13 = scalar_select %p4102_p8, 1, 0 }
  0x13   : > { %p3672_p9 = pneg %p4102_p8  ;;  %s272_s18 = sshll.u32 %s4009_s17, 4  ;;  %s273_s18 = int_to_ptr.vmem [resolvable:$true] %s272_s18 }
  0x14   : > { %s3869_s19 = scalar_lea.vmem %s257_s15, 3072  ;;  %p3877_p5 = scmp.lt.s32.totalorder %s257_s15, %s257_s15 }
  0x15   : > { %p4111_p11 = pnand %p3672_p9, %p4911_p1  ;;  %p3870_p13 = scmp.ne.s32.totalorder %s257_s15, %s3869_s19 }
  0x16   : > { %p3878_p7 = scmp.lt.s32.totalorder %s3869_s19, %s3869_s19 }
  0x17   : > { %p3860_p12 = pneg %p4111_p11 }
  0x18   : > { %p3879_p10 = por %p3878_p7, %p3877_p5 }
  0x19   : > { %p3872_p0 = pnand %p3870_p13, %p3860_p12 }
  0x1b   : > { %p3873_p3 = pneg %p3872_p0 }
  0x1d   : > { %p3880_p9 = pnand %p3879_p10, %p3873_p3 }
  0x1f   : > { %3883 = shalt.err (!%p3880_p9)
}
  0x20   : > { %s4909_s20 = smov 64   ;;  %s4910_s21 = smov 4  }
  0x21   : > { %s4921_s4 = sld [smem:[#allocation13_spill]]  ;;  %s3895_s24 = scalar_lea.vmem %s273_s18, 3072 }
  0x22   : > { %p3896_p13 = scmp.ne.s32.totalorder %s273_s18, %s3895_s24  ;;  %p3903_p10 = scmp.lt.s32.totalorder %s273_s18, %s273_s18 }
  0x23   : > { %p3904_p3 = scmp.lt.s32.totalorder %s3895_s24, %s3895_s24 }
  0x24   : > { %p3898_p0 = pnand %p3896_p13, %p3860_p12 }
  0x25   : > { %p3905_p7 = por %p3904_p3, %p3903_p10 }
  0x26   : > { %p3899_p5 = pneg %p3898_p0 }
  0x27   : > { %3675 = dma.hbm_to_vmem [thread:$0]  (!%p4111_p11), %s4921_s4, 3072, %s257_s15, [#allocation7], %s4909_s20, %s4909_s20, %s4910_s21  }
  0x28   : > { %p3906_p9 = pnand %p3905_p7, %p3899_p5 }
  0x2a   : > { %3909 = shalt.err (!%p3906_p9)
}
  0x2b   : > { %s4922_s6 = sld [smem:[#allocation14_spill]]  ;;  %s4140_s10 = sadd.s32 1, %s4006_s30  }
  0x2c   : > { %s32_s14 = sadd.s32 1, %s4002_s29  ;;  %s29_s15 = ssub.s32 %s4006_s30, %s4140_s10 }
  0x2d   : > { %p39_p12 = scmp.ne.s32.totalorder %s4002_s29, %s3998_s28  ;;  %p30_p13 = scmp.eq.s32.totalorder %s29_s15, 0 }
  0x2e   : > { %p40_p0 = scmp.eq.s32.totalorder %s4006_s30, 0  ;;  %p3689_p10 = scmp.lt.s32.totalorder %s4006_s30, 2 }
  0x2f   : > { %p4150_p5 = por %p231_p2, %p39_p12  ;;  %s289_s19 = sand.u32 1, %s4002_s29  }
  0x30   : > { %s4156_s17 = scalar_select %p30_p13, %s4002_s29, %s32_s14  }
  0x31   : > { %3678 = dma.hbm_to_vmem [thread:$0]  (!%p4111_p11), %s4922_s6, 3072, %s273_s18, [#allocation7], %s4909_s20, %s4909_s20, %s4910_s21  }
  0x32   : > { %s4923_s16 = scalar_select %p4150_p5, 1, 0 }
  0x33   : > { %p41_p3 = por %p40_p0, %p39_p12  ;;  %s2893_s22 = sshll.u32 %s289_s19, 6 }
  0x34   : > { %s3105_s18 = sshll.u32 %s4006_s30, 10  ;;  %s293_s26 = scalar_lea.vmem [#allocation3], %s2893_s22 }
  0x35   : > { %s4163_s25 = scalar_lea.hbm %s4900_s0, %s3105_s18  ;;  %s300_s15 = sshll.u32 %s293_s26, 4  ;;  %s4165_s15 = int_to_ptr.vmem [resolvable:$true] %s300_s15 }
  0x36   : > { %p4167_p2 = pnand %p3689_p10, %p41_p3  ;;  %s4171_s14 = scalar_lea.sflag [#allocation4], %s289_s19 }
  0x37   : > { %s3910_s21 = scalar_lea.hbm %s4163_s25, 1024  ;;  %s3915_s22 = scalar_lea.hbm %s4900_s0, 2048 }
  0x38   : > { %p3911_p11 = scmp.ne.s32.totalorder %s4163_s25, %s3910_s21  ;;  %p3912_p7 = pneg %p4167_p2 }
  0x39   : > { %p3916_p13 = scmp.lt.s32.totalorder %s4163_s25, %s4900_s0  ;;  %p3917_p0 = scmp.lt.s32.totalorder %s3915_s22, %s3910_s21 }
  0x3a   : > { %p3913_p9 = pnand %p3912_p7, %p3911_p11 }
  0x3b   : > { %p3918_p10 = por %p3917_p0, %p3916_p13 }
  0x3c   : > { %p3914_p12 = pneg %p3913_p9 }
  0x3e   : > { %p3919_p3 = pnand %p3918_p10, %p3914_p12 }
  0x40   : > { %3922 = shalt.err (!%p3919_p3)
}
  0x41   : > { %s3923_s19 = scalar_lea.vmem %s4165_s15, 1024  ;;  %s4012_s4 = smov [#allocation3]  }
  0x42   : > { %p3924_p1 = scmp.ne.s32.totalorder %s4165_s15, %s3923_s19  ;;  %s3928_s6 = sshll.u32 %s4012_s4, 4  ;;  %s3929_s6 = int_to_ptr.vmem [resolvable:$false] %s3928_s6 }
  0x43   : > { %s3930_s18 = scalar_lea.vmem %s3929_s6, 2048  ;;  %p3931_p9 = scmp.lt.s32.totalorder %s4165_s15, %s3929_s6 }
  0x44   : > { %p3926_p6 = pnand %p3924_p1, %p3912_p7  ;;  %p3932_p5 = scmp.lt.s32.totalorder %s3930_s18, %s3923_s19 }
  0x46   : > { %p3927_p11 = pneg %p3926_p6  ;;  %p3933_p4 = por %p3932_p5, %p3931_p9 }
  0x48   : > { %p3934_p8 = pnand %p3933_p4, %p3927_p11 }
  0x4a   : > { %3937 = shalt.err (!%p3934_p8)
}
  0x4b   : > { %s4925_s21 = smov 4   ;;  %s4926_s23 = smov 64  }
  0x4c   : > { %3682 = dma.hbm_to_vmem [thread:$0]  (!%p4167_p2), %s4163_s25, 1024, %s4165_s15, %s4171_s14, %s4926_s23, %s4926_s23, %s4925_s21  }
  0x4d   : > { %p4927_p1 = scmp.ne.s32.totalorder %s4919_s13, 0 }
  0x4e   : > { %s4198_s4 = sand.u32 (!%p4927_p1), 1, %s3998_s28   ;;  %p4928_p4 = scmp.ne.s32.totalorder (!%p4927_p1), %s4917_s11, 0 }
  0x4f   : > { %334 = sbr.rel (%p4927_p1) target bundleno = 1676 (0x68c), region = 52  ;;  %s2897_s6 = sshll.u32 (!%p4927_p1), %s4198_s4, 6 }
  0x50   : > { %s337_s22 = scalar_lea.sflag (!%p4927_p1), [#allocation4], %s4198_s4  ;;  %s4202_s24 = scalar_lea.vmem (!%p4927_p1), [#allocation3], %s2897_s6 }
  0x54   : > { %3981 = dma.done.wait (%p4928_p4), %s337_s22, 1024  }
  0x55   : > { %3983 = vsyncadd (%p4928_p4), %s337_s22, 4294966272  ;;  %p4929_p6 = scmp.eq.s32.totalorder %s4083_s9, 0 }
  0x57   : > { %3985 = dma.done.wait (%p4929_p6), [#allocation7], 6144   ;;  %p4930_p8 = pmov %p4929_p6 }
  0x58   : > { %p394_p5 = scmp.lt.s32.totalorder %s4083_s9, 1  ;;  %v4013_v0 = vmov 0   ;;  %v3734_v57 = vld [vmem:[#allocation6 + $0x78] sm:$0xff]   ;;  %v3237_v58 = vld [vmem:[%s4202_s24 + $0x8] sm:$0xff]   ;;  %v3206_v59 = vld [vmem:[%s4202_s24] sm:$0xff]   ;;  %s3204_s15 = sshll.u32 %s4083_s9, 11 }
  0x59   : > { %3987 = vsyncadd (%p4930_p8), [#allocation7], 4294961152  ;;  %3733 = vset.pattern.permute.xlu1 %v4013_v0  ;;  %3732 = vset.pattern.permute.xlu0 %v4013_v0  ;;  %v3211_v60 = vunpack.c.l.bf16 %v3237_v58  ;;  %v3207_v61 = vunpack.c.l.bf16 %v3206_v59  ;;  %v3212_v0 = vunpack.c.h.bf16 %v3237_v58  ;;  %s2750_s18 = scalar_lea.sflag [#allocation5], %s4198_s4  ;;  %p4931_p7 = scmp.ne.s32.totalorder %s4923_s16, 0 }
  0x5a   : > { %s4214_s13 = scalar_select %p394_p5, %s4083_s9, 1 }
  0x5b   : > { %s4014_s21 = smov [#allocation9]  }
  0x5c   : > { %s3106_s20 = sshll.u32 %s4214_s13, 7  ;;  %s401_s23 = scalar_lea.vmem %s4902_s2, %s4214_s13 }
  0x5d   : > { %s4220_s11 = scalar_lea.vmem %s4901_s1, %s3106_s20  ;;  %s4227_s19 = scalar_lea.vmem %s4903_s3, %s3106_s20 }
  0x5e   : > { %v410_v1 = vld [vmem:[%s4220_s11 + $0x10] sm:$0xff]  ;;  %v408_v2 = vld [vmem:[%s4220_s11] sm:$0xff]  ;;  %v411_v3 = vld [vmem:[%s4220_s11 + $0x18] sm:$0xff]  ;;  %s2900_s20 = sshll.u32 %s4198_s4, 7 }
  0x5f   : > { %469 = vperm.xlu1 %3733, %v410_v1   ;;  %459 = vperm.xlu0 %3732, %v408_v2   ;;  %v409_v4 = vld [vmem:[%s4220_s11 + $0x8] sm:$0xff]  ;;  %v412_v6 = vld [vmem:[%s4220_s11 + $0x20] sm:$0xff]  ;;  %v4234_v7 = vld [vmem:[%s4227_s19 + $0x70] sm:$0xff]  ;;  %v3208_v1 = vunpack.c.h.bf16 %v3206_v59  ;;  %s4813_s25 = scalar_lea.vmem [#allocation9], %s2900_s20 }
  0x60   : > { %v413_v5 = vld [vmem:[%s4220_s11 + $0x28] sm:$0xff]  ;;  %v4237_v8 = vld [vmem:[%s4227_s19 + $0x78] sm:$0xff]  ;;  %v3122_v10 = vpack.c.bf16 %v4234_v7, %v4234_v7  ;;  %v4246_v12 = vld [vmem:[%s4227_s19 + $0x60] sm:$0xff] }
  0x61   : > { %v606_v9 = vpack.c.bf16 %v4237_v8, %v4234_v7  ;;  %v3123_v11 = vpack.c.bf16 %v4237_v8, %v4237_v8  ;;  %v4249_v13 = vld [vmem:[%s4227_s19 + $0x68] sm:$0xff]  ;;  %v4252_v14 = vld [vmem:[%s4227_s19 + $0x50] sm:$0xff]  ;;  %v3120_v16 = vpack.c.bf16 %v4246_v12, %v4246_v12  ;;  %v4261_v18 = vld [vmem:[%s4227_s19 + $0x58] sm:$0xff] }
  0x62   : > { %v605_v15 = vpack.c.bf16 %v4249_v13, %v4246_v12  ;;  %v3121_v17 = vpack.c.bf16 %v4249_v13, %v4249_v13  ;;  %v3118_v19 = vpack.c.bf16 %v4252_v14, %v4252_v14  ;;  %v4266_v20 = vld [vmem:[%s4227_s19 + $0x40] sm:$0xff]  ;;  %677 = vst [vmem:[#allocation2 + $0xa8] sm:$0xf] %v3122_v10  ;;  %v3119_v21 = vpack.c.bf16 %v4261_v18, %v4261_v18  ;;  %v4271_v22 = vld [vmem:[%s4227_s19 + $0x48] sm:$0xff]  ;;  %v4276_v24 = vld [vmem:[%s4227_s19 + $0x30] sm:$0xff] }
  0x63   : > { %474 = vperm.xlu1 %3733, %v411_v3   ;;  %464 = vperm.xlu0 %3732, %v409_v4   ;;  %678 = vst [vmem:[#allocation2 + $0xb4] sm:$0xf] %v3123_v11  ;;  %v3116_v23 = vpack.c.bf16 %v4266_v20, %v4266_v20  ;;  %675 = vst [vmem:[#allocation2 + $0x90] sm:$0xf] %v3120_v16  ;;  %v3117_v25 = vpack.c.bf16 %v4271_v22, %v4271_v22  ;;  %v4281_v26 = vld [vmem:[%s4227_s19 + $0x38] sm:$0xff]  ;;  %v4286_v28 = vld [vmem:[%s4227_s19 + $0x20] sm:$0xff] }
  0x64   : > { %3468 = vmatprep.subr.bf16.mxu0 %v606_v9  ;;  %676 = vst [vmem:[#allocation2 + $0x9c] sm:$0xf] %v3121_v17  ;;  %673 = vst [vmem:[#allocation2 + $0x78] sm:$0xf] %v3118_v19  ;;  %v3114_v27 = vpack.c.bf16 %v4276_v24, %v4276_v24  ;;  %v4289_v29 = vld [vmem:[%s4227_s19 + $0x28] sm:$0xff]  ;;  %v415_v30 = vld [vmem:[%s4220_s11 + $0x38] sm:$0xff]  ;;  %v3115_v32 = vpack.c.bf16 %v4281_v26, %v4281_v26  ;;  %v3112_v33 = vpack.c.bf16 %v4286_v28, %v4286_v28 }
  0x65   : > { %v414_v31 = vld [vmem:[%s4220_s11 + $0x30] sm:$0xff]  ;;  %3469 = vmatpush3.bf16.msra.mxu0 %v606_v9  ;;  %674 = vst [vmem:[#allocation2 + $0x84] sm:$0xf] %v3119_v21  ;;  %671 = vst [vmem:[#allocation2 + $0x60] sm:$0xf] %v3116_v23  ;;  %v3113_v34 = vpack.c.bf16 %v4289_v29, %v4289_v29  ;;  %v604_v36 = vpack.c.bf16 %v4261_v18, %v4252_v14  ;;  %v4305_v37 = vld [vmem:[%s4227_s19 + $0x18] sm:$0xff]  ;;  %v603_v46 = vpack.c.bf16 %v4271_v22, %v4266_v20 }
  0x66   : > { %v4300_v35 = vld [vmem:[%s4227_s19 + $0x10] sm:$0xff]  ;;  %3470 = vmatprep.subr.bf16.mxu0 %v605_v15  ;;  %672 = vst [vmem:[#allocation2 + $0x6c] sm:$0xf] %v3117_v25  ;;  %669 = vst [vmem:[#allocation2 + $0x48] sm:$0xf] %v3114_v27  ;;  %v417_v39 = vld [vmem:[%s4220_s11 + $0x48] sm:$0xff]  ;;  %v3111_v40 = vpack.c.bf16 %v4305_v37, %v4305_v37  ;;  %v602_v49 = vpack.c.bf16 %v4281_v26, %v4276_v24  ;;  %v601_v52 = vpack.c.bf16 %v4289_v29, %v4286_v28 }
  0x67   : > { %484 = vperm.xlu1 %3733, %v413_v5   ;;  %479 = vperm.xlu0 %3732, %v412_v6   ;;  %v3110_v38 = vpack.c.bf16 %v4300_v35, %v4300_v35  ;;  %670 = vst [vmem:[#allocation2 + $0x54] sm:$0xf] %v3115_v32  ;;  %667 = vst [vmem:[#allocation2 + $0x30] sm:$0xf] %v3112_v33  ;;  %v4313_v41 = vld [vmem:[%s4227_s19] sm:$0xff]  ;;  %v4316_v42 = vld [vmem:[%s4227_s19 + $0x8] sm:$0xff]  ;;  %v600_v55 = vpack.c.bf16 %v4305_v37, %v4300_v35 }
  0x68   : > { %668 = vst [vmem:[#allocation2 + $0x3c] sm:$0xf] %v3113_v34  ;;  %v3108_v43 = vpack.c.bf16 %v4313_v41, %v4313_v41  ;;  %v3109_v44 = vpack.c.bf16 %v4316_v42, %v4316_v42  ;;  %v416_v45 = vld [vmem:[%s4220_s11 + $0x40] sm:$0xff]  ;;  %666 = vst [vmem:[#allocation2 + $0x24] sm:$0xf] %v3111_v40  ;;  %v419_v47 = vld [vmem:[%s4220_s11 + $0x58] sm:$0xff]  ;;  %v599_v56 = vpack.c.bf16 %v4316_v42, %v4313_v41 }
  0x69   : > { %665 = vst [vmem:[#allocation2 + $0x18] sm:$0xf] %v3110_v38  ;;  %3471 = vmatpush3.bf16.msra.mxu0 %v605_v15  ;;  %v418_v48 = vld [vmem:[%s4220_s11 + $0x50] sm:$0xff]  ;;  %v421_v50 = vld [vmem:[%s4220_s11 + $0x68] sm:$0xff]  ;;  %v420_v51 = vld [vmem:[%s4220_s11 + $0x60] sm:$0xff] }
  0x6a   : > { %3472 = vmatprep.subr.bf16.mxu0 %v604_v36  ;;  %663 = vst [vmem:[#allocation2] sm:$0xf] %v3108_v43  ;;  %664 = vst [vmem:[#allocation2 + $0xc] sm:$0xf] %v3109_v44  ;;  %v423_v53 = vld [vmem:[%s4220_s11 + $0x78] sm:$0xff]  ;;  %v422_v54 = vld [vmem:[%s4220_s11 + $0x70] sm:$0xff] }
  0x6b   : > { %494 = vperm.xlu1 %3733, %v415_v30   ;;  %489 = vperm.xlu0 %3732, %v414_v31   ;;  %v3238_v2 = vld [vmem:[%s4202_s24 + $0x10] sm:$0xff]   ;;  %v4346_v5 = vld [vmem:[%s401_s23] ss:$0 sm:$0xff]  ;;  %v3239_v17 = vld [vmem:[%s4202_s24 + $0x18] sm:$0xff]   ;;  %s2763_s11 = sshll.u32 %s4813_s25, 4  ;;  %s3942_s23 = sshll.u32 %s4014_s21, 4  ;;  %s4855_s11 = int_to_ptr.vmem [resolvable:$true] %s2763_s11  ;;  %s3943_s23 = int_to_ptr.vmem [resolvable:$false] %s3942_s23 }
  0x6c   : > { %v3216_v15 = vunpack.c.h.bf16 %v3238_v2  ;;  %v3215_v16 = vunpack.c.l.bf16 %v3238_v2  ;;  %v3220_v31 = vunpack.c.h.bf16 %v3239_v17  ;;  %v3219_v32 = vunpack.c.l.bf16 %v3239_v17  ;;  %v3735_v40 = vld [vmem:[#allocation6 + $0x38] sm:$0xff]   ;;  %v3736_v43 = vld [vmem:[#allocation6 + $0x70] sm:$0xff]   ;;  %v3739_v2 = vld [vmem:[#allocation6 + $0x28] sm:$0xff]   ;;  %s3938_s9 = scalar_lea.vmem %s4855_s11, 2048  ;;  %s3944_s6 = scalar_lea.vmem %s3943_s23, 4096 }
  0x6d   : > { %3473 = vmatpush3.bf16.msra.mxu0 %v604_v36  ;;  %p3939_p2 = scmp.ne.s32.totalorder %s4855_s11, %s3938_s9  ;;  %p3945_p0 = scmp.lt.s32.totalorder %s4855_s11, %s3943_s23 }
  0x6e   : > { %3474 = vmatprep.subr.bf16.mxu0 %v603_v46  ;;  %p3946_p10 = scmp.lt.s32.totalorder %s3944_s6, %s3938_s9 }
  0x6f   : > { %504 = vperm.xlu1 %3733, %v417_v39   ;;  %499 = vperm.xlu0 %3732, %v416_v45   ;;  %v3240_v39 = vld [vmem:[%s4202_s24 + $0x20] sm:$0xff]   ;;  %p3940_p12 = pnand %p3939_p2, %p4931_p7 }
  0x70   : > { %p3947_p3 = por %p3946_p10, %p3945_p0 }
  0x71   : > { %3475 = vmatpush3.bf16.msra.mxu0 %v603_v46  ;;  %p3941_p13 = pneg %p3940_p12 }
  0x72   : > { %3476 = vmatprep.subr.bf16.mxu0 %v602_v49 }
  0x73   : > { %514 = vperm.xlu1 %3733, %v419_v47   ;;  %509 = vperm.xlu0 %3732, %v418_v48   ;;  %v3224_v48 = vunpack.c.h.bf16 %v3240_v39  ;;  %p3948_p11 = pnand %p3947_p3, %p3941_p13 }
  0x75   : > { %3477 = vmatpush3.bf16.msra.mxu0 %v602_v49 }
  0x76   : > { %3478 = vmatprep.subr.bf16.mxu0 %v601_v52 }
  0x77   : > { %524 = vperm.xlu1 %3733, %v421_v50   ;;  %519 = vperm.xlu0 %3732, %v420_v51  }
  0x79   : > { %3479 = vmatpush3.bf16.msra.mxu0 %v601_v52  ;;  %v3223_v52 = vunpack.c.l.bf16 %v3240_v39 }
  0x7a   : > { %3480 = vmatprep.subr.bf16.mxu0 %v600_v55 }
  0x7b   : > { %534 = vperm.xlu1 %3733, %v423_v53   ;;  %529 = vperm.xlu0 %3732, %v422_v54   ;;  %v3241_v53 = vld [vmem:[%s4202_s24 + $0x28] sm:$0xff]   ;;  %v3737_v54 = vld [vmem:[#allocation6 + $0x30] sm:$0xff]  }
  0x7d   : > { %3481 = vmatpush3.bf16.msra.mxu0 %v600_v55  ;;  %v3738_v55 = vld [vmem:[#allocation6 + $0x68] sm:$0xff]  }
  0x7e   : > { %3482 = vmatprep.subr.bf16.mxu0 %v599_v56 }
  0x81   : > { %3483 = vmatpush3.bf16.msra.mxu0 %v599_v56 }
  0x82   : > { %3276 = vmatprep.subr.bf16.mxu0 %v3734_v57 }
  0xda   : > { %v470_v62 = vpop.permute.xlu1 %469  ;;  %v460_v63 = vpop.permute.xlu0 %459 }
  0xdb   : > { %v539_v3 = vmul.f32 %v3211_v60, %v470_v62  ;;  %v537_v4 = vmul.f32 %v3207_v61, %v460_v63  ;;  %v3228_v60 = vunpack.c.h.bf16 %v3241_v53 }
  0xdd   : > { %v561_v19 = vmul.f32 %v4346_v5, %v539_v3  ;;  %v559_v21 = vmul.f32 %v4346_v5, %v537_v4 }
  0xde   : > { %v475_v6 = vpop.permute.xlu1 %474  ;;  %v465_v9 = vpop.permute.xlu0 %464 }
  0xdf   : > { %v540_v10 = vmul.f32 %v3212_v0, %v475_v6  ;;  %v538_v11 = vmul.f32 %v3208_v1, %v465_v9  ;;  %v3227_v0 = vunpack.c.l.bf16 %v3241_v53  ;;  %v3242_v1 = vld [vmem:[%s4202_s24 + $0x30] sm:$0xff]   ;;  %v3741_v53 = vld [vmem:[#allocation6 + $0x20] sm:$0xff]  }
  0xe0   : > { %v3231_v17 = vunpack.c.l.bf16 %v3242_v1 }
  0xe1   : > { %v562_v23 = vmul.f32 %v4346_v5, %v540_v10  ;;  %v560_v25 = vmul.f32 %v4346_v5, %v538_v11  ;;  %v3232_v10 = vunpack.c.h.bf16 %v3242_v1 }
  0xe2   : > { %v485_v27 = vpop.permute.xlu1 %484  ;;  %v480_v30 = vpop.permute.xlu0 %479 }
  0xe3   : > { %v4353_v33 = vpack.c.bf16 %v562_v23, %v561_v19  ;;  %v4355_v34 = vpack.c.bf16 %v560_v25, %v559_v21  ;;  %v542_v36 = vmul.f32 %v3216_v15, %v485_v27  ;;  %v541_v38 = vmul.f32 %v3215_v16, %v480_v30  ;;  %v3243_v19 = vld [vmem:[%s4202_s24 + $0x38] sm:$0xff]  }
  0xe4   : > { %v3236_v30 = vunpack.c.h.bf16 %v3243_v19 }
  0xe5   : > { %v564_v44 = vmul.f32 %v4346_v5, %v542_v36  ;;  %v563_v45 = vmul.f32 %v4346_v5, %v541_v38  ;;  %3484 = vmatprep.mubr.bf16.mxu0 %v4355_v34  ;;  %3516 = vmatprep.mubr.bf16.mxu1 %v4355_v34  ;;  %v3235_v38 = vunpack.c.l.bf16 %v3243_v19 }
  0xe6   : > { %v495_v46 = vpop.permute.xlu1 %494  ;;  %3485 = vmatmul.mubr.bf16.vlgmr.msra.gmra.mxu0 %v4353_v33  ;;  %v490_v47 = vpop.permute.xlu0 %489 }
  0xe7   : > { %v4363_v49 = vpack.c.bf16 %v564_v44, %v563_v45  ;;  %v544_v50 = vmul.f32 %v3220_v31, %v495_v46  ;;  %v543_v51 = vmul.f32 %v3219_v32, %v490_v47  ;;  %3277 = vmatpush3.bf16.msra.mxu0 %v3735_v40 }
  0xe8   : > { %3278 = vmatprep.subr.bf16.mxu0 %v3736_v43 }
  0xe9   : > { %v566_v56 = vmul.f32 %v4346_v5, %v544_v50  ;;  %v565_v57 = vmul.f32 %v4346_v5, %v543_v51  ;;  %3488 = vmatprep.mubr.bf16.mxu0 %v4363_v49 }
  0xea   : > { %v505_v58 = vpop.permute.xlu1 %504  ;;  %v500_v59 = vpop.permute.xlu0 %499 }
  0xeb   : > { %v4369_v61 = vpack.c.bf16 %v566_v56, %v565_v57  ;;  %v546_v62 = vmul.f32 %v3224_v48, %v505_v58  ;;  %v545_v63 = vmul.f32 %v3223_v52, %v500_v59  ;;  %3279 = vmatpush3.bf16.msra.mxu0 %v3737_v54  ;;  %v3740_v52 = vld [vmem:[#allocation6 + $0x60] sm:$0xff]   ;;  %v3742_v54 = vld [vmem:[#allocation6 + $0x58] sm:$0xff]   ;;  %v3744_v56 = vld [vmem:[#allocation6 + $0x50] sm:$0xff]  }
  0xec   : > { %3280 = vmatprep.subr.bf16.mxu0 %v3738_v55  ;;  %v3743_v55 = vld [vmem:[#allocation6 + $0x18] sm:$0xff]   ;;  %v3745_v57 = vld [vmem:[#allocation6 + $0x10] sm:$0xff]   ;;  %v3746_v58 = vld [vmem:[#allocation6 + $0x48] sm:$0xff]  }
  0xed   : > { %v568_v3 = vmul.f32 %v4346_v5, %v546_v62  ;;  %v567_v4 = vmul.f32 %v4346_v5, %v545_v63  ;;  %v3748_v59 = vld [vmem:[#allocation6 + $0x40] sm:$0xff]   ;;  %v681_v62 = vmul.f32 0.0, %v4300_v35  ;;  %v679_v63 = vmul.f32 0.0, %v4313_v41 }
  0xee   : > { %v515_v6 = vpop.permute.xlu1 %514  ;;  %3489 = vmatmul.mubr.bf16.gmra.mxu0 %v4369_v61  ;;  %v510_v9 = vpop.permute.xlu0 %509 }
  0xef   : > { %v4375_v11 = vpack.c.bf16 %v568_v3, %v567_v4  ;;  %v548_v15 = vmul.f32 %v3228_v60, %v515_v6  ;;  %v547_v16 = vmul.f32 %v3227_v0, %v510_v9  ;;  %3281 = vmatpush3.bf16.msra.mxu0 %v3739_v2  ;;  %v3749_v60 = vld [vmem:[#allocation6] sm:$0xff]   ;;  %v682_v2 = vmul.f32 0.0, %v4305_v37 }
  0xf0   : > { %3282 = vmatprep.subr.bf16.mxu0 %v3740_v52  ;;  %v680_v9 = vmul.f32 0.0, %v4316_v42 }
  0xf1   : > { %v570_v21 = vmul.f32 %v4346_v5, %v548_v15  ;;  %v569_v23 = vmul.f32 %v4346_v5, %v547_v16  ;;  %3492 = vmatprep.mubr.bf16.mxu0 %v4375_v11 }
  0xf2   : > { %v525_v25 = vpop.permute.xlu1 %524  ;;  %v520_v27 = vpop.permute.xlu0 %519 }
  0xf3   : > { %v4381_v31 = vpack.c.bf16 %v570_v21, %v569_v23  ;;  %v550_v32 = vmul.f32 %v3232_v10, %v525_v25  ;;  %v549_v36 = vmul.f32 %v3231_v17, %v520_v27  ;;  %3283 = vmatpush3.bf16.msra.mxu0 %v3741_v53  ;;  %v685_v17 = vmul.f32 0.0, %v4276_v24 }
  0xf4   : > { %3284 = vmatprep.subr.bf16.mxu0 %v3742_v54  ;;  %v683_v25 = vmul.f32 0.0, %v4286_v28  ;;  %v690_v54 = vmul.f32 0.0, %v4261_v18  ;;  %v693_v18 = vmul.f32 0.0, %v4234_v7 }
  0xf5   : > { %v572_v39 = vmul.f32 %v4346_v5, %v550_v32  ;;  %v571_v40 = vmul.f32 %v4346_v5, %v549_v36  ;;  %v686_v36 = vmul.f32 0.0, %v4281_v26 }
  0xf6   : > { %v535_v43 = vpop.permute.xlu1 %534  ;;  %3493 = vmatmul.mubr.bf16.gmra.mxu0 %v4381_v31  ;;  %v530_v44 = vpop.permute.xlu0 %529 }
  0xf7   : > { %v4386_v45 = vpack.c.bf16 %v572_v39, %v571_v40  ;;  %v552_v46 = vmul.f32 %v3236_v30, %v535_v43  ;;  %v551_v47 = vmul.f32 %v3235_v38, %v530_v44  ;;  %3285 = vmatpush3.bf16.msra.mxu0 %v3743_v55  ;;  %v684_v40 = vmul.f32 0.0, %v4289_v29 }
  0xf8   : > { %3286 = vmatprep.subr.bf16.mxu0 %v3744_v56  ;;  %v3752_v56 = vld [vmem:[#allocation2] ss:$12 sps:$4 sm:$0xff]  }
  0xf9   : > { %v574_v48 = vmul.f32 %v4346_v5, %v552_v46  ;;  %v573_v50 = vmul.f32 %v4346_v5, %v551_v47  ;;  %3496 = vmatprep.mubr.bf16.mxu0 %v4386_v45  ;;  %v3747_v5 = vld [vmem:[#allocation6 + $0x8] sm:$0xff]   ;;  %v689_v46 = vmul.f32 0.0, %v4252_v14 }
  0xfb   : > { %v4391_v51 = vpack.c.bf16 %v574_v48, %v573_v50  ;;  %3287 = vmatpush3.bf16.msra.mxu0 %v3745_v57  ;;  %v687_v50 = vmul.f32 0.0, %v4266_v20  ;;  %v688_v20 = vmul.f32 0.0, %v4271_v22  ;;  %v691_v22 = vmul.f32 0.0, %v4246_v12 }
  0xfc   : > { %3288 = vmatprep.subr.bf16.mxu0 %v3746_v58 }
  0xfe   : > { %3497 = vmatmul.mubr.bf16.gmra.mxu0 %v4391_v51 }
  0xff   : > { %3289 = vmatpush3.bf16.msra.mxu0 %v3747_v5 }
 0x100   : > { %3290 = vmatprep.subr.bf16.mxu0 %v3748_v59 }
 0x103   : > { %3291 = vmatpush3.bf16.msra.mxu0 %v3749_v60 }
 0x1a6   : > { %v3486_v0 = vpop.f32.mrf.mxu0 }
 0x1a7   : > { %v4396_v1 = vadd.f32 %v3486_v0, %v681_v62 }
 0x1a8   : > { %v729_v3 = vpop.f32.mrf.mxu0 }
 0x1a9   : > { %v3126_v4 = vpack.c.bf16 %v4396_v1, %v4396_v1  ;;  %v4401_v6 = vadd.f32 %v729_v3, %v679_v63 }
 0x1aa   : > { %v3487_v10 = vpop.f32.mrf.mxu0 }
 0x1ab   : > { %858 = vst [vmem:[#allocation2 + $0x1c] sm:$0xf] %v3126_v4  ;;  %v3124_v15 = vpack.c.bf16 %v4401_v6, %v4401_v6  ;;  %v4406_v16 = vadd.f32 %v3487_v10, %v682_v2  ;;  %v694_v10 = vmul.f32 0.0, %v4237_v8 }
 0x1ac   : > { %v732_v19 = vpop.f32.mrf.mxu0 }
 0x1ad   : > { %856 = vst [vmem:[#allocation2 + $0x4] sm:$0xf] %v3124_v15  ;;  %v3127_v21 = vpack.c.bf16 %v4406_v16, %v4406_v16  ;;  %v4411_v23 = vadd.f32 %v732_v19, %v680_v9  ;;  %v692_v19 = vmul.f32 0.0, %v4249_v13 }
 0x1ae   : > { %v3490_v27 = vpop.f32.mrf.mxu0 }
 0x1af   : > { %859 = vst [vmem:[#allocation2 + $0x28] sm:$0xf] %v3127_v21  ;;  %v3125_v30 = vpack.c.bf16 %v4411_v23, %v4411_v23  ;;  %v4416_v32 = vadd.f32 %v3490_v27, %v685_v17  ;;  %v3755_v21 = vld [vmem:[#allocation2 + $0x18] ss:$12 sps:$4 sm:$0xff]  }
 0x1b0   : > { %v745_v38 = vpop.f32.mrf.mxu0 }
 0x1b1   : > { %857 = vst [vmem:[#allocation2 + $0x10] sm:$0xf] %v3125_v30  ;;  %v3130_v24 = vpack.c.bf16 %v4416_v32, %v4416_v32  ;;  %v4421_v39 = vadd.f32 %v745_v38, %v683_v25 }
 0x1b2   : > { %v3491_v43 = vpop.f32.mrf.mxu0 }
 0x1b3   : > { %862 = vst [vmem:[#allocation2 + $0x4c] sm:$0xf] %v3130_v24  ;;  %v3128_v28 = vpack.c.bf16 %v4421_v39, %v4421_v39  ;;  %v4426_v44 = vadd.f32 %v3491_v43, %v686_v36  ;;  %v3758_v43 = vld [vmem:[#allocation2 + $0x30] ss:$12 sps:$4 sm:$0xff]  }
 0x1b4   : > { %v748_v47 = vpop.f32.mrf.mxu0 }
 0x1b5   : > { %860 = vst [vmem:[#allocation2 + $0x34] sm:$0xf] %v3128_v28  ;;  %v3131_v26 = vpack.c.bf16 %v4426_v44, %v4426_v44  ;;  %v4431_v48 = vadd.f32 %v748_v47, %v684_v40 }
 0x1b6   : > { %v3494_v52 = vpop.f32.mrf.mxu0  ;;  %v3753_v59 = vld [vmem:[#allocation2 + $0x1c] ss:$12 sps:$4 sm:$0xff]  }
 0x1b7   : > { %863 = vst [vmem:[#allocation2 + $0x58] sm:$0xf] %v3131_v26  ;;  %v3129_v29 = vpack.c.bf16 %v4431_v48, %v4431_v48  ;;  %v4436_v53 = vadd.f32 %v3494_v52, %v689_v46  ;;  %v3761_v26 = vld [vmem:[#allocation2 + $0x48] ss:$12 sps:$4 sm:$0xff]   ;;  %v795_v52 = vpack.c.bf16 %v4426_v44, %v4416_v32 }
 0x1b8   : > { %v761_v55 = vpop.f32.mrf.mxu0  ;;  %v3750_v14 = vld [vmem:[#allocation2 + $0x4] ss:$12 sps:$4 sm:$0xff]  }
 0x1b9   : > { %861 = vst [vmem:[#allocation2 + $0x40] sm:$0xf] %v3129_v29  ;;  %v3134_v57 = vpack.c.bf16 %v4436_v53, %v4436_v53  ;;  %v4441_v58 = vadd.f32 %v761_v55, %v687_v50  ;;  %1488 = vmatprep.mubr.bf16.mxu0 %v3750_v14  ;;  %v794_v29 = vpack.c.bf16 %v4431_v48, %v4421_v39 }
 0x1ba   : > { %v3495_v5 = vpop.f32.mrf.mxu0  ;;  %1489 = vmatmul.mubr.bf16.vlgmr.msra.gmra.mxu0 %v3752_v56  ;;  %v793_v14 = vpack.c.bf16 %v4406_v16, %v4396_v1  ;;  %v792_v56 = vpack.c.bf16 %v4411_v23, %v4401_v6 }
 0x1bb   : > { %866 = vst [vmem:[#allocation2 + $0x7c] sm:$0xf] %v3134_v57  ;;  %v3132_v60 = vpack.c.bf16 %v4441_v58, %v4441_v58  ;;  %v4446_v62 = vadd.f32 %v3495_v5, %v690_v54  ;;  %1496 = vmatprep.mubr.bf16.mxu0 %v3753_v59  ;;  %v3764_v54 = vld [vmem:[#allocation2 + $0x60] ss:$12 sps:$4 sm:$0xff]   ;;  %v3767_v57 = vld [vmem:[#allocation2 + $0x78] ss:$12 sps:$4 sm:$0xff]  }
 0x1bc   : > { %v764_v63 = vpop.f32.mrf.mxu0  ;;  %v3770_v5 = vld [vmem:[#allocation2 + $0x90] ss:$12 sps:$4 sm:$0xff]  }
 0x1bd   : > { %864 = vst [vmem:[#allocation2 + $0x64] sm:$0xf] %v3132_v60  ;;  %v3135_v0 = vpack.c.bf16 %v4446_v62, %v4446_v62  ;;  %v4451_v2 = vadd.f32 %v764_v63, %v688_v20  ;;  %v797_v46 = vpack.c.bf16 %v4446_v62, %v4436_v53  ;;  %v3773_v60 = vld [vmem:[#allocation2 + $0xa8] ss:$12 sps:$4 sm:$0xff]  }
 0x1be   : > { %v3498_v3 = vpop.f32.mrf.mxu0  ;;  %v3759_v28 = vld [vmem:[#allocation2 + $0x4c] ss:$12 sps:$4 sm:$0xff]   ;;  %v3775_v63 = vld [vmem:[#allocation6 + $0xb0] sm:$0xff]  }
 0x1bf   : > { %867 = vst [vmem:[#allocation2 + $0x88] sm:$0xf] %v3135_v0  ;;  %v3133_v4 = vpack.c.bf16 %v4451_v2, %v4451_v2  ;;  %v4456_v9 = vadd.f32 %v3498_v3, %v693_v18  ;;  %v796_v47 = vpack.c.bf16 %v4451_v2, %v4441_v58  ;;  %v3774_v18 = vld [vmem:[#allocation6 + $0xb8] sm:$0xff]   ;;  %v3776_v0 = vld [vmem:[#allocation6 + $0xa8] sm:$0xff]  }
 0x1c0   : > { %v777_v7 = vpop.f32.mrf.mxu0  ;;  %v3756_v25 = vld [vmem:[#allocation2 + $0x34] ss:$12 sps:$4 sm:$0xff]   ;;  %v3778_v3 = vld [vmem:[#allocation6 + $0x98] sm:$0xff]  }
 0x1c1   : > { %865 = vst [vmem:[#allocation2 + $0x70] sm:$0xf] %v3133_v4  ;;  %v3138_v15 = vpack.c.bf16 %v4456_v9, %v4456_v9  ;;  %v4461_v17 = vadd.f32 %v777_v7, %v691_v22  ;;  %v3777_v22 = vld [vmem:[#allocation6 + $0xa0] sm:$0xff]   ;;  %v3779_v4 = vld [vmem:[#allocation6 + $0x90] sm:$0xff]  }
 0x1c2   : > { %v3499_v12 = vpop.f32.mrf.mxu0  ;;  %1497 = vmatmul.mubr.bf16.gmra.mxu0 %v3755_v21  ;;  %v3781_v7 = vld [vmem:[#allocation6 + $0x80] sm:$0xff]  }
 0x1c3   : > { %870 = vst [vmem:[#allocation2 + $0xac] sm:$0xf] %v3138_v15  ;;  %v3136_v27 = vpack.c.bf16 %v4461_v17, %v4461_v17  ;;  %v4466_v30 = vadd.f32 %v3499_v12, %v694_v10  ;;  %1504 = vmatprep.mubr.bf16.mxu0 %v3756_v25  ;;  %v3780_v10 = vld [vmem:[#allocation6 + $0x88] sm:$0xff]   ;;  %v874_v15 = vmul.f32 0.0, %v4396_v1  ;;  %v872_v12 = vmul.f32 0.0, %v4401_v6 }
 0x1c4   : > { %v780_v8 = vpop.f32.mrf.mxu0 }
 0x1c5   : > { %868 = vst [vmem:[#allocation2 + $0x94] sm:$0xf] %v3136_v27  ;;  %v3139_v36 = vpack.c.bf16 %v4466_v30, %v4466_v30  ;;  %v4470_v38 = vadd.f32 %v780_v8, %v692_v19  ;;  %v799_v13 = vpack.c.bf16 %v4466_v30, %v4456_v9 }
 0x1c6   : > { %v3765_v55 = vld [vmem:[#allocation2 + $0x7c] ss:$12 sps:$4 sm:$0xff]  }
 0x1c7   : > { %871 = vst [vmem:[#allocation2 + $0xb8] sm:$0xf] %v3139_v36  ;;  %v3137_v24 = vpack.c.bf16 %v4470_v38, %v4470_v38  ;;  %3500 = vmatprep.subr.bf16.mxu1 %v799_v13  ;;  %v798_v40 = vpack.c.bf16 %v4470_v38, %v4461_v17  ;;  %v875_v36 = vmul.f32 0.0, %v4406_v16 }
 0x1c8   : > { %3501 = vmatpush3.bf16.msra.mxu1 %v799_v13  ;;  %v3762_v50 = vld [vmem:[#allocation2 + $0x64] ss:$12 sps:$4 sm:$0xff]  }
 0x1c9   : > { %869 = vst [vmem:[#allocation2 + $0xa0] sm:$0xf] %v3137_v24  ;;  %3502 = vmatprep.subr.bf16.mxu1 %v798_v40 }
 0x1ca   : > { %1505 = vmatmul.mubr.bf16.gmra.mxu0 %v3758_v43 }
 0x1cb   : > { %1512 = vmatprep.mubr.bf16.mxu0 %v3759_v28  ;;  %v873_v28 = vmul.f32 0.0, %v4411_v23  ;;  %v879_v23 = vmul.f32 0.0, %v4426_v44  ;;  %v882_v44 = vmul.f32 0.0, %v4436_v53  ;;  %v883_v53 = vmul.f32 0.0, %v4446_v62 }
 0x1cc   : > { %3503 = vmatpush3.bf16.msra.mxu1 %v798_v40  ;;  %v886_v62 = vmul.f32 0.0, %v4456_v9 }
 0x1cd   : > { %3504 = vmatprep.subr.bf16.mxu1 %v797_v46 }
 0x1ce   : > { %v3771_v59 = vld [vmem:[#allocation2 + $0xac] ss:$12 sps:$4 sm:$0xff]  }
 0x1d0   : > { %3505 = vmatpush3.bf16.msra.mxu1 %v797_v46  ;;  %v3768_v20 = vld [vmem:[#allocation2 + $0x94] ss:$12 sps:$4 sm:$0xff]  }
 0x1d1   : > { %3506 = vmatprep.subr.bf16.mxu1 %v796_v47 }
 0x1d2   : > { %1513 = vmatmul.mubr.bf16.gmra.mxu0 %v3761_v26 }
 0x1d3   : > { %1520 = vmatprep.mubr.bf16.mxu0 %v3762_v50 }
 0x1d4   : > { %3507 = vmatpush3.bf16.msra.mxu1 %v796_v47  ;;  %v878_v47 = vmul.f32 0.0, %v4416_v32 }
 0x1d5   : > { %3508 = vmatprep.subr.bf16.mxu1 %v795_v52 }
 0x1d8   : > { %3509 = vmatpush3.bf16.msra.mxu1 %v795_v52 }
 0x1d9   : > { %3510 = vmatprep.subr.bf16.mxu1 %v794_v29 }
 0x1da   : > { %1521 = vmatmul.mubr.bf16.gmra.mxu0 %v3764_v54 }
 0x1db   : > { %1528 = vmatprep.mubr.bf16.mxu0 %v3765_v55 }
 0x1dc   : > { %3511 = vmatpush3.bf16.msra.mxu1 %v794_v29  ;;  %v876_v29 = vmul.f32 0.0, %v4421_v39  ;;  %v877_v39 = vmul.f32 0.0, %v4431_v48  ;;  %v880_v48 = vmul.f32 0.0, %v4441_v58  ;;  %v881_v58 = vmul.f32 0.0, %v4451_v2 }
 0x1dd   : > { %3512 = vmatprep.subr.bf16.mxu1 %v793_v14 }
 0x1e0   : > { %3513 = vmatpush3.bf16.msra.mxu1 %v793_v14 }
 0x1e1   : > { %3514 = vmatprep.subr.bf16.mxu1 %v792_v56 }
 0x1e2   : > { %1529 = vmatmul.mubr.bf16.gmra.mxu0 %v3767_v57 }
 0x1e3   : > { %1536 = vmatprep.mubr.bf16.mxu0 %v3768_v20 }
 0x1e4   : > { %3515 = vmatpush3.bf16.msra.mxu1 %v792_v56 }
 0x1e5   : > { %3532 = vmatprep.subr.bf16.mxu1 %v3774_v18 }
 0x1e7   : > { %3517 = vmatmul.mubr.bf16.vlgmr.msra.gmra.mxu1 %v4353_v33 }
 0x1e8   : > { %3520 = vmatprep.mubr.bf16.mxu1 %v4363_v49  ;;  %3533 = vmatpush3.bf16.msra.mxu1 %v3774_v18 }
 0x1e9   : > { %3534 = vmatprep.subr.bf16.mxu1 %v3775_v63 }
 0x1ea   : > { %1537 = vmatmul.mubr.bf16.gmra.mxu0 %v3770_v5 }
 0x1eb   : > { %1544 = vmatprep.mubr.bf16.mxu0 %v3771_v59  ;;  %v3846_v59 = vld [vmem:[%s4227_s19 + $0x30] sm:$0xff] }
 0x1ec   : > { %3535 = vmatpush3.bf16.msra.mxu1 %v3775_v63 }
 0x1ed   : > { %3536 = vmatprep.subr.bf16.mxu1 %v3776_v0 }
 0x1ef   : > { %3521 = vmatmul.mubr.bf16.gmra.mxu1 %v4369_v61 }
 0x1f0   : > { %3524 = vmatprep.mubr.bf16.mxu1 %v4375_v11  ;;  %3537 = vmatpush3.bf16.msra.mxu1 %v3776_v0 }
 0x1f1   : > { %3538 = vmatprep.subr.bf16.mxu1 %v3777_v22 }
 0x1f2   : > { %1545 = vmatmul.mubr.bf16.gmra.mxu0 %v3773_v60 }
 0x1f3   : > { %3612 = vmatprep.mubr.bf16.mxu0 %v4355_v34 }
 0x1f4   : > { %3539 = vmatpush3.bf16.msra.mxu1 %v3777_v22  ;;  %v3847_v22 = vld [vmem:[%s4227_s19 + $0x20] sm:$0xff] }
 0x1f5   : > { %3540 = vmatprep.subr.bf16.mxu1 %v3778_v3 }
 0x1f7   : > { %3525 = vmatmul.mubr.bf16.gmra.mxu1 %v4381_v31 }
 0x1f8   : > { %3528 = vmatprep.mubr.bf16.mxu1 %v4386_v45  ;;  %3541 = vmatpush3.bf16.msra.mxu1 %v3778_v3 }
 0x1f9   : > { %3542 = vmatprep.subr.bf16.mxu1 %v3779_v4 }
 0x1fc   : > { %3543 = vmatpush3.bf16.msra.mxu1 %v3779_v4 }
 0x1fd   : > { %3544 = vmatprep.subr.bf16.mxu1 %v3780_v10 }
 0x1ff   : > { %3529 = vmatmul.mubr.bf16.gmra.mxu1 %v4391_v51 }
 0x200   : > { %3545 = vmatpush3.bf16.msra.mxu1 %v3780_v10 }
 0x201   : > { %3546 = vmatprep.subr.bf16.mxu1 %v3781_v7 }
 0x204   : > { %3547 = vmatpush3.bf16.msra.mxu1 %v3781_v7 }
 0x2a7   : > { %v3518_v19 = vpop.f32.mrf.mxu1 }
 0x2a8   : > { %v931_v21 = vadd.f32 %v3518_v19, %v874_v15  ;;  %v3848_v15 = vld [vmem:[%s4227_s19 + $0x38] sm:$0xff] }
 0x2a9   : > { %v922_v25 = vpop.f32.mrf.mxu1 }
 0x2aa   : > { %v987_v27 = vmul.f32 2.0, %v931_v21  ;;  %v923_v8 = vadd.f32 %v922_v25, %v872_v12 }
 0x2ab   : > { %v3519_v13 = vpop.f32.mrf.mxu1 }
 0x2ac   : > { %v1003_v24 = vsub.f32 %v987_v27, %v4300_v35  ;;  %v985_v40 = vmul.f32 2.0, %v923_v8  ;;  %v934_v43 = vadd.f32 %v3519_v13, %v875_v36  ;;  %v3849_v8 = vld [vmem:[%s4227_s19 + $0x28] sm:$0xff] }
 0x2ad   : > { %v925_v46 = vpop.f32.mrf.mxu1 }
 0x2ae   : > { %v3142_v1 = vpack.c.bf16 %v1003_v24, %v1003_v24  ;;  %v1001_v26 = vsub.f32 %v985_v40, %v4313_v41  ;;  %v988_v50 = vmul.f32 2.0, %v934_v43  ;;  %v926_v6 = vadd.f32 %v925_v46, %v873_v28  ;;  %v3850_v28 = vld [vmem:[%s4227_s19 + $0x50] sm:$0xff] }
 0x2af   : > { %v3522_v52 = vpop.f32.mrf.mxu1 }
 0x2b0   : > { %1083 = vst [vmem:[#allocation2 + $0x20] sm:$0xf] %v3142_v1  ;;  %v3140_v16 = vpack.c.bf16 %v1001_v26, %v1001_v26  ;;  %v1004_v35 = vsub.f32 %v988_v50, %v4305_v37  ;;  %v986_v54 = vmul.f32 2.0, %v926_v6  ;;  %v947_v55 = vadd.f32 %v3522_v52, %v878_v47  ;;  %v3851_v52 = vld [vmem:[%s4227_s19 + $0x40] sm:$0xff] }
 0x2b1   : > { %v938_v14 = vpop.f32.mrf.mxu1 }
 0x2b2   : > { %1081 = vst [vmem:[#allocation2 + $0x8] sm:$0xf] %v3140_v16  ;;  %v3143_v32 = vpack.c.bf16 %v1004_v35, %v1004_v35  ;;  %v1002_v41 = vsub.f32 %v986_v54, %v4316_v42  ;;  %v991_v56 = vmul.f32 2.0, %v947_v55  ;;  %v939_v57 = vadd.f32 %v938_v14, %v876_v29 }
 0x2b3   : > { %v3523_v20 = vpop.f32.mrf.mxu1  ;;  %v884_v55 = vmul.f32 0.0, %v4461_v17  ;;  %v885_v17 = vmul.f32 0.0, %v4470_v38 }
 0x2b4   : > { %1084 = vst [vmem:[#allocation2 + $0x2c] sm:$0xf] %v3143_v32  ;;  %v3141_v5 = vpack.c.bf16 %v1002_v41, %v1002_v41  ;;  %v1007_v37 = vsub.f32 %v991_v56, %v3846_v59  ;;  %v989_v60 = vmul.f32 2.0, %v939_v57  ;;  %v950_v18 = vadd.f32 %v3523_v20, %v879_v23  ;;  %v3852_v23 = vld [vmem:[%s4227_s19 + $0x58] sm:$0xff] }
 0x2b5   : > { %v941_v63 = vpop.f32.mrf.mxu1  ;;  %v887_v57 = vmul.f32 0.0, %v4466_v30 }
 0x2b6   : > { %1082 = vst [vmem:[#allocation2 + $0x14] sm:$0xf] %v3141_v5  ;;  %v3146_v0 = vpack.c.bf16 %v1007_v37, %v1007_v37  ;;  %v1005_v42 = vsub.f32 %v989_v60, %v3847_v22  ;;  %v992_v3 = vmul.f32 2.0, %v950_v18  ;;  %v942_v4 = vadd.f32 %v941_v63, %v877_v39  ;;  %v3853_v39 = vld [vmem:[%s4227_s19 + $0x48] sm:$0xff]  ;;  %v3854_v63 = vld [vmem:[%s4227_s19 + $0x70] sm:$0xff] }
 0x2b7   : > { %v3526_v10 = vpop.f32.mrf.mxu1 }
 0x2b8   : > { %1087 = vst [vmem:[#allocation2 + $0x50] sm:$0xf] %v3146_v0  ;;  %v3144_v7 = vpack.c.bf16 %v1005_v42, %v1005_v42  ;;  %v1008_v19 = vsub.f32 %v992_v3, %v3848_v15  ;;  %v990_v21 = vmul.f32 2.0, %v942_v4  ;;  %v963_v12 = vadd.f32 %v3526_v10, %v882_v44  ;;  %v3855_v4 = vld [vmem:[%s4227_s19 + $0x60] sm:$0xff] }
 0x2b9   : > { %v954_v25 = vpop.f32.mrf.mxu1 }
 0x2ba   : > { %1085 = vst [vmem:[#allocation2 + $0x38] sm:$0xf] %v3144_v7  ;;  %v3147_v27 = vpack.c.bf16 %v1008_v19, %v1008_v19  ;;  %v1006_v36 = vsub.f32 %v990_v21, %v3849_v8  ;;  %v995_v13 = vmul.f32 2.0, %v963_v12  ;;  %v955_v24 = vadd.f32 %v954_v25, %v880_v48  ;;  %v3856_v19 = vld [vmem:[%s4227_s19 + $0x78] sm:$0xff] }
 0x2bb   : > { %v3527_v40 = vpop.f32.mrf.mxu1  ;;  %v3783_v54 = vld [vmem:[#allocation2 + $0x20] ss:$12 sps:$4 sm:$0xff]  }
 0x2bc   : > { %1088 = vst [vmem:[#allocation2 + $0x5c] sm:$0xf] %v3147_v27  ;;  %v3145_v43 = vpack.c.bf16 %v1006_v36, %v1006_v36  ;;  %v1011_v46 = vsub.f32 %v995_v13, %v3850_v28  ;;  %v993_v47 = vmul.f32 2.0, %v955_v24  ;;  %v966_v1 = vadd.f32 %v3527_v40, %v883_v53  ;;  %v3857_v53 = vld [vmem:[%s4227_s19 + $0x68] sm:$0xff]  ;;  %s4853_s19 = scalar_lea.hbm %s4908_s8, %s3204_s15 }
 0x2bd   : > { %v957_v26 = vpop.f32.mrf.mxu1  ;;  %v3782_v50 = vld [vmem:[#allocation2 + $0x8] ss:$12 sps:$4 sm:$0xff]  }
 0x2be   : > { %1086 = vst [vmem:[#allocation2 + $0x44] sm:$0xf] %v3145_v43  ;;  %v3150_v6 = vpack.c.bf16 %v1011_v46, %v1011_v46  ;;  %v1009_v29 = vsub.f32 %v993_v47, %v3851_v52  ;;  %v996_v16 = vmul.f32 2.0, %v966_v1  ;;  %v958_v35 = vadd.f32 %v957_v26, %v881_v58  ;;  %3548 = vmatprep.mubr.bf16.mxu1 %v3782_v50  ;;  %v3292_v58 = vpop.f32.mrf.mxu0 }
 0x2bf   : > { %v3530_v2 = vpop.f32.mrf.mxu1  ;;  %3549 = vmatmul.mubr.bf16.vlgmr.msra.gmra.mxu1 %v3783_v54 }
 0x2c0   : > { %1091 = vst [vmem:[#allocation2 + $0x80] sm:$0xf] %v3150_v6  ;;  %v3148_v14 = vpack.c.bf16 %v1009_v29, %v1009_v29  ;;  %v1012_v32 = vsub.f32 %v996_v16, %v3852_v23  ;;  %v994_v41 = vmul.f32 2.0, %v958_v35  ;;  %v979_v9 = vadd.f32 %v3530_v2, %v886_v62  ;;  %v3293_v43 = vpop.f32.mrf.mxu0 }
 0x2c1   : > { %v970_v56 = vpop.f32.mrf.mxu1 }
 0x2c2   : > { %1089 = vst [vmem:[#allocation2 + $0x68] sm:$0xf] %v3148_v14  ;;  %v3151_v20 = vpack.c.bf16 %v1012_v32, %v1012_v32  ;;  %v1010_v5 = vsub.f32 %v994_v41, %v3853_v39  ;;  %v999_v59 = vmul.f32 2.0, %v979_v9  ;;  %v971_v37 = vadd.f32 %v970_v56, %v884_v55  ;;  %v3295_v28 = vpop.f32.mrf.mxu0 }
 0x2c3   : > { %v3531_v60 = vpop.f32.mrf.mxu1  ;;  %v3785_v15 = vld [vmem:[#allocation2 + $0x50] ss:$12 sps:$4 sm:$0xff]  }
 0x2c4   : > { %1092 = vst [vmem:[#allocation2 + $0x8c] sm:$0xf] %v3151_v20  ;;  %v3149_v18 = vpack.c.bf16 %v1010_v5, %v1010_v5  ;;  %v1015_v44 = vsub.f32 %v999_v59, %v3854_v63  ;;  %v997_v0 = vmul.f32 2.0, %v971_v37  ;;  %v982_v22 = vadd.f32 %v3531_v60, %v887_v57  ;;  %v3296_v46 = vpop.f32.mrf.mxu0  ;;  %v4542_v59 = vld [vmem:[%s4905_s5] ss:$0 sm:$0xff] }
 0x2c5   : > { %v973_v42 = vpop.f32.mrf.mxu1  ;;  %v3784_v3 = vld [vmem:[#allocation2 + $0x38] ss:$12 sps:$4 sm:$0xff]   ;;  %v3294_v5 = vadd.f32 %v3293_v43, %v3292_v58  ;;  %v3297_v63 = vadd.f32 %v3296_v46, %v3295_v28 }
 0x2c6   : > { %1090 = vst [vmem:[#allocation2 + $0x74] sm:$0xf] %v3149_v18  ;;  %v3154_v30 = vpack.c.bf16 %v1015_v44, %v1015_v44  ;;  %v1013_v10 = vsub.f32 %v997_v0, %v3855_v4  ;;  %v1000_v48 = vmul.f32 2.0, %v982_v22  ;;  %v974_v7 = vadd.f32 %v973_v42, %v885_v17  ;;  %3552 = vmatprep.mubr.bf16.mxu1 %v3784_v3  ;;  %v3298_v47 = vpop.f32.mrf.mxu0 }
 0x2c7   : > { %3553 = vmatmul.mubr.bf16.gmra.mxu1 %v3785_v15  ;;  %v1491_v0 = vadd.f32 %v3294_v5, %v4542_v59 }
 0x2c8   : > { %1095 = vst [vmem:[#allocation2 + $0xb0] sm:$0xf] %v3154_v30  ;;  %v3152_v38 = vpack.c.bf16 %v1013_v10, %v1013_v10  ;;  %v1016_v21 = vsub.f32 %v1000_v48, %v3856_v19  ;;  %v998_v12 = vmul.f32 2.0, %v974_v7  ;;  %v3299_v1 = vpop.f32.mrf.mxu0 }
 0x2c9   : > { %v3300_v20 = vadd.f32 %v3299_v1, %v3298_v47 }
 0x2ca   : > { %1093 = vst [vmem:[#allocation2 + $0x98] sm:$0xf] %v3152_v38  ;;  %v3155_v25 = vpack.c.bf16 %v1016_v21, %v1016_v21  ;;  %v1014_v27 = vsub.f32 %v998_v12, %v3857_v53  ;;  %v3301_v26 = vpop.f32.mrf.mxu0  ;;  %v1494_v21 = vadd.f32 %v3297_v63, %v4542_v59 }
 0x2cb   : > { %v3787_v13 = vld [vmem:[#allocation2 + $0x80] ss:$12 sps:$4 sm:$0xff]   ;;  %v1499_v60 = vadd.f32 %v3300_v20, %v4542_v59 }
 0x2cc   : > { %1096 = vst [vmem:[#allocation2 + $0xbc] sm:$0xf] %v3155_v25  ;;  %v3153_v8 = vpack.c.bf16 %v1014_v27, %v1014_v27  ;;  %v3302_v62 = vpop.f32.mrf.mxu0 }
 0x2cd   : > { %v3786_v36 = vld [vmem:[#allocation2 + $0x68] ss:$12 sps:$4 sm:$0xff]   ;;  %v3303_v37 = vadd.f32 %v3302_v62, %v3301_v26 }
 0x2ce   : > { %1094 = vst [vmem:[#allocation2 + $0xa4] sm:$0xf] %v3153_v8  ;;  %3556 = vmatprep.mubr.bf16.mxu1 %v3786_v36  ;;  %v3304_v50 = vpop.f32.mrf.mxu0 }
 0x2cf   : > { %3557 = vmatmul.mubr.bf16.gmra.mxu1 %v3787_v13  ;;  %v1502_v4 = vadd.f32 %v3303_v37, %v4542_v59 }
 0x2d0   : > { %v3305_v6 = vpop.f32.mrf.mxu0 }
 0x2d1   : > { %v3306_v10 = vadd.f32 %v3305_v6, %v3304_v50 }
 0x2d2   : > { %v3307_v52 = vpop.f32.mrf.mxu0 }
 0x2d3   : > { %v3789_v40 = vld [vmem:[#allocation2 + $0xb0] ss:$12 sps:$4 sm:$0xff]  }
 0x2d4   : > { %v3308_v29 = vpop.f32.mrf.mxu0 }
 0x2d5   : > { %v3788_v24 = vld [vmem:[#allocation2 + $0x98] ss:$12 sps:$4 sm:$0xff]   ;;  %v3309_v58 = vadd.f32 %v3308_v29, %v3307_v52 }
 0x2d6   : > { %3560 = vmatprep.mubr.bf16.mxu1 %v3788_v24  ;;  %v3310_v16 = vpop.f32.mrf.mxu0 }
 0x2d7   : > { %3561 = vmatmul.mubr.bf16.gmra.mxu1 %v3789_v40  ;;  %v1507_v40 = vadd.f32 %v3306_v10, %v4542_v59 }
 0x2d8   : > { %3580 = vmatprep.mubr.bf16.mxu1 %v4355_v34  ;;  %v3311_v35 = vpop.f32.mrf.mxu0 }
 0x2d9   : > { %v3312_v22 = vadd.f32 %v3311_v35, %v3310_v16 }
 0x2da   : > { %v3313_v54 = vpop.f32.mrf.mxu0 }
 0x2db   : > { %v1515_v25 = vadd.f32 %v3312_v22, %v4542_v59 }
 0x2dc   : > { %v3314_v2 = vpop.f32.mrf.mxu0 }
 0x2dd   : > { %v3315_v53 = vadd.f32 %v3314_v2, %v3313_v54 }
 0x2de   : > { %v3316_v55 = vpop.f32.mrf.mxu0 }
 0x2df   : > { %v1518_v6 = vadd.f32 %v3315_v53, %v4542_v59 }
 0x2e0   : > { %v3317_v14 = vpop.f32.mrf.mxu0 }
 0x2e1   : > { %v3318_v16 = vadd.f32 %v3317_v14, %v3316_v55 }
 0x2e2   : > { %v4531_v23 = vpop.f32.mrf.mxu0 }
 0x2e3   : > { %v1523_v63 = vadd.f32 %v3318_v16, %v4542_v59 }
 0x2e4   : > { %v4533_v34 = vpop.f32.mrf.mxu0 }
 0x2e6   : > { %v3322_v32 = vpop.f32.mrf.mxu0 }
 0x2e8   : > { %v3323_v41 = vpop.f32.mrf.mxu0 }
 0x2e9   : > { %v3324_v47 = vadd.f32 %v3323_v41, %v3322_v32  ;;  %v1510_v32 = vadd.f32 %v3309_v58, %v4542_v59 }
 0x2ea   : > { %v3325_v9 = vpop.f32.mrf.mxu0 }
 0x2eb   : > { %v1531_v20 = vadd.f32 %v3324_v47, %v4542_v59 }
 0x2ec   : > { %v3326_v56 = vpop.f32.mrf.mxu0 }
 0x2ed   : > { %v3327_v5 = vadd.f32 %v3326_v56, %v3325_v9 }
 0x2ee   : > { %v4535_v57 = vpop.f32.mrf.mxu0 }
 0x2f0   : > { %v4537_v39 = vpop.f32.mrf.mxu0 }
 0x2f2   : > { %v4545_v17 = vpop.f32.mrf.mxu0 }
 0x2f4   : > { %v4551_v48 = vpop.f32.mrf.mxu0 }
 0x2f5   : > { %v3333_v58 = vadd.f32 %v4551_v48, %v4545_v17 }
 0x2f6   : > { %v3334_v13 = vpop.f32.mrf.mxu0 }
 0x2f8   : > { %v3335_v52 = vpop.f32.mrf.mxu0 }
 0x2f9   : > { %v3336_v56 = vadd.f32 %v3335_v52, %v3334_v13 }
 0x37f   : > { %v3550_v18 = vpop.f32.mrf.mxu1 }
 0x380   : > { %v1596_v44 = vadd.f32 %v3550_v18, %v1499_v60  ;;  %v3337_v60 = vpop.f32.mrf.mxu0 }
 0x381   : > { %v1587_v42 = vpop.f32.mrf.mxu1 }
 0x382   : > { %v4548_v3 = vmax.f32 %v1596_v44, 0.0  ;;  %v1588_v30 = vadd.f32 %v1587_v42, %v1491_v0  ;;  %v3321_v44 = vadd.f32 %v4533_v34, %v4531_v23  ;;  %v3330_v23 = vadd.f32 %v4537_v39, %v4535_v57  ;;  %v3338_v34 = vpop.f32.mrf.mxu0 }
 0x383   : > { %v3551_v7 = vpop.f32.mrf.mxu1 }
 0x384   : > { %v3158_v15 = vpack.c.bf16 %v4548_v3, %v4548_v3  ;;  %v4555_v38 = vmax.f32 %v1588_v30, 0.0  ;;  %v1599_v19 = vadd.f32 %v3551_v7, %v1502_v4  ;;  %v1534_v7 = vadd.f32 %v3327_v5, %v4542_v59 }
 0x385   : > { %v1590_v12 = vpop.f32.mrf.mxu1 }
 0x386   : > { %1732 = vst [vmem:[#allocation2 + $0x18] sm:$0xf] %v3158_v15  ;;  %v3156_v27 = vpack.c.bf16 %v4555_v38, %v4555_v38  ;;  %v4561_v8 = vmax.f32 %v1599_v19, 0.0  ;;  %v1591_v36 = vadd.f32 %v1590_v12, %v1494_v21 }
 0x387   : > { %v3554_v24 = vpop.f32.mrf.mxu1 }
 0x388   : > { %1730 = vst [vmem:[#allocation2] sm:$0xf] %v3156_v27  ;;  %v3159_v43 = vpack.c.bf16 %v4561_v8, %v4561_v8  ;;  %v4566_v28 = vmax.f32 %v1591_v36, 0.0  ;;  %v1612_v46 = vadd.f32 %v3554_v24, %v1515_v25  ;;  %v1526_v25 = vadd.f32 %v3321_v44, %v4542_v59 }
 0x389   : > { %v1603_v1 = vpop.f32.mrf.mxu1  ;;  %v1547_v27 = vadd.f32 %v3336_v56, %v4542_v59  ;;  %v3339_v36 = vadd.f32 %v3338_v34, %v3337_v60  ;;  %v3795_v34 = vld [vmem:[#allocation8 + $0x28] sm:$0xff]  }
 0x38a   : > { %1733 = vst [vmem:[#allocation2 + $0x24] sm:$0xf] %v3159_v43  ;;  %v3157_v26 = vpack.c.bf16 %v4566_v28, %v4566_v28  ;;  %v4570_v62 = vmax.f32 %v1612_v46, 0.0  ;;  %v1604_v50 = vadd.f32 %v1603_v1, %v1507_v40  ;;  %v1539_v40 = vadd.f32 %v3330_v23, %v4542_v59  ;;  %v3794_v23 = vld [vmem:[#allocation8 + $0x68] sm:$0xff]  }
 0x38b   : > { %v3555_v29 = vpop.f32.mrf.mxu1  ;;  %v1550_v16 = vadd.f32 %v3339_v36, %v4542_v59  ;;  %v1666_v56 = vpack.c.bf16 %v4566_v28, %v4555_v38  ;;  %v3802_v36 = vld [vmem:[#allocation8 + $0x48] sm:$0xff]  }
 0x38c   : > { %1731 = vst [vmem:[#allocation2 + $0xc] sm:$0xf] %v3157_v26  ;;  %v3162_v35 = vpack.c.bf16 %v4570_v62, %v4570_v62  ;;  %v4575_v54 = vmax.f32 %v1604_v50, 0.0  ;;  %v1615_v2 = vadd.f32 %v3555_v29, %v1518_v6 }
 0x38d   : > { %v1606_v41 = vpop.f32.mrf.mxu1 }
 0x38e   : > { %1736 = vst [vmem:[#allocation2 + $0x48] sm:$0xf] %v3162_v35  ;;  %v3160_v37 = vpack.c.bf16 %v4575_v54, %v4575_v54  ;;  %v4581_v55 = vmax.f32 %v1615_v2, 0.0  ;;  %v1607_v14 = vadd.f32 %v1606_v41, %v1510_v32  ;;  %v1542_v35 = vadd.f32 %v3333_v58, %v4542_v59 }
 0x38f   : > { %v3558_v18 = vpop.f32.mrf.mxu1 }
 0x390   : > { %1734 = vst [vmem:[#allocation2 + $0x30] sm:$0xf] %v3160_v37  ;;  %v3163_v0 = vpack.c.bf16 %v4581_v55, %v4581_v55  ;;  %v4588_v22 = vmax.f32 %v1607_v14, 0.0  ;;  %v1628_v9 = vadd.f32 %v3558_v18, %v1531_v20  ;;  %v1669_v44 = vpack.c.bf16 %v4581_v55, %v4570_v62 }
 0x391   : > { %v1619_v42 = vpop.f32.mrf.mxu1 }
 0x392   : > { %1737 = vst [vmem:[#allocation2 + $0x54] sm:$0xf] %v3163_v0  ;;  %v3161_v30 = vpack.c.bf16 %v4588_v22, %v4588_v22  ;;  %v4592_v4 = vmax.f32 %v1628_v9, 0.0  ;;  %v1620_v10 = vadd.f32 %v1619_v42, %v1523_v63  ;;  %v1668_v0 = vpack.c.bf16 %v4588_v22, %v4575_v54  ;;  %v3790_v42 = vld [vmem:[#allocation8 + $0x78] sm:$0xff]  }
 0x393   : > { %v3559_v15 = vpop.f32.mrf.mxu1  ;;  %v1667_v9 = vpack.c.bf16 %v4561_v8, %v4548_v3 }
 0x394   : > { %1735 = vst [vmem:[#allocation2 + $0x3c] sm:$0xf] %v3161_v30  ;;  %v3166_v19 = vpack.c.bf16 %v4592_v4, %v4592_v4  ;;  %v4599_v21 = vmax.f32 %v1620_v10, 0.0  ;;  %v1631_v12 = vadd.f32 %v3559_v15, %v1534_v7  ;;  %v3791_v30 = vld [vmem:[#allocation8 + $0x38] sm:$0xff]   ;;  %v3792_v10 = vld [vmem:[#allocation8 + $0x70] sm:$0xff]   ;;  %v3796_v15 = vld [vmem:[#allocation8 + $0x60] sm:$0xff]  }
 0x395   : > { %v1622_v53 = vpop.f32.mrf.mxu1  ;;  %v3793_v7 = vld [vmem:[#allocation8 + $0x30] sm:$0xff]  }
 0x396   : > { %1740 = vst [vmem:[#allocation2 + $0x78] sm:$0xf] %v3166_v19  ;;  %v3164_v13 = vpack.c.bf16 %v4599_v21, %v4599_v21  ;;  %v4605_v57 = vmax.f32 %v1631_v12, 0.0  ;;  %v1623_v39 = vadd.f32 %v1622_v53, %v1526_v25  ;;  %v3797_v19 = vld [vmem:[#allocation8 + $0x20] sm:$0xff]   ;;  %v3798_v12 = vld [vmem:[#allocation8 + $0x58] sm:$0xff]   ;;  %v3800_v53 = vld [vmem:[#allocation8 + $0x50] sm:$0xff]  }
 0x397   : > { %v3562_v24 = vpop.f32.mrf.mxu1  ;;  %v3799_v25 = vld [vmem:[#allocation8 + $0x18] sm:$0xff]  }
 0x398   : > { %1738 = vst [vmem:[#allocation2 + $0x60] sm:$0xf] %v3164_v13  ;;  %v3167_v43 = vpack.c.bf16 %v4605_v57, %v4605_v57  ;;  %v4612_v46 = vmax.f32 %v1623_v39, 0.0  ;;  %v1644_v47 = vadd.f32 %v3562_v24, %v1547_v27  ;;  %v1671_v18 = vpack.c.bf16 %v4605_v57, %v4592_v4  ;;  %v3801_v27 = vld [vmem:[#allocation8 + $0x10] sm:$0xff]   ;;  %v3803_v13 = vld [vmem:[#allocation8 + $0x8] sm:$0xff]   ;;  %v3804_v39 = vld [vmem:[#allocation8 + $0x40] sm:$0xff]  }
 0x399   : > { %v1635_v1 = vpop.f32.mrf.mxu1  ;;  %v3805_v24 = vld [vmem:[#allocation8] sm:$0xff]  }
 0x39a   : > { %1741 = vst [vmem:[#allocation2 + $0x84] sm:$0xf] %v3167_v43  ;;  %v3165_v26 = vpack.c.bf16 %v4612_v46, %v4612_v46  ;;  %v4616_v50 = vmax.f32 %v1644_v47, 0.0  ;;  %v1636_v6 = vadd.f32 %v1635_v1, %v1539_v40  ;;  %v1670_v63 = vpack.c.bf16 %v4612_v46, %v4599_v21 }
 0x39b   : > { %v3563_v52 = vpop.f32.mrf.mxu1  ;;  %v1748_v40 = vmul.f32 0.0, %v4548_v3  ;;  %v1746_v47 = vmul.f32 0.0, %v4555_v38 }
 0x39c   : > { %1739 = vst [vmem:[#allocation2 + $0x6c] sm:$0xf] %v3165_v26  ;;  %v3170_v17 = vpack.c.bf16 %v4616_v50, %v4616_v50  ;;  %v4621_v48 = vmax.f32 %v1636_v6, 0.0  ;;  %v1647_v29 = vadd.f32 %v3563_v52, %v1550_v16  ;;  %v1749_v16 = vmul.f32 0.0, %v4561_v8 }
 0x39d   : > { %v1638_v2 = vpop.f32.mrf.mxu1 }
 0x39e   : > { %1744 = vst [vmem:[#allocation2 + $0xa8] sm:$0xf] %v3170_v17  ;;  %v3168_v32 = vpack.c.bf16 %v4621_v48, %v4621_v48  ;;  %v4626_v41 = vmax.f32 %v1647_v29, 0.0  ;;  %v1639_v20 = vadd.f32 %v1638_v2, %v1542_v35  ;;  %v1747_v35 = vmul.f32 0.0, %v4566_v28 }
 0x3a0   : > { %1742 = vst [vmem:[#allocation2 + $0x90] sm:$0xf] %v3168_v32  ;;  %v3171_v5 = vpack.c.bf16 %v4626_v41, %v4626_v41  ;;  %v4630_v37 = vmax.f32 %v1639_v20, 0.0  ;;  %v1673_v14 = vpack.c.bf16 %v4626_v41, %v4616_v50 }
 0x3a2   : > { %1745 = vst [vmem:[#allocation2 + $0xb4] sm:$0xf] %v3171_v5  ;;  %v3169_v59 = vpack.c.bf16 %v4630_v37, %v4630_v37  ;;  %3564 = vmatprep.subr.bf16.mxu1 %v1673_v14  ;;  %v1672_v60 = vpack.c.bf16 %v4630_v37, %v4621_v48  ;;  %v1752_v5 = vmul.f32 0.0, %v4570_v62 }
 0x3a3   : > { %3565 = vmatpush3.bf16.msra.mxu1 %v1673_v14 }
 0x3a4   : > { %1743 = vst [vmem:[#allocation2 + $0x9c] sm:$0xf] %v3169_v59  ;;  %3566 = vmatprep.subr.bf16.mxu1 %v1672_v60 }
 0x3a7   : > { %3567 = vmatpush3.bf16.msra.mxu1 %v1672_v60 }
 0x3a8   : > { %3568 = vmatprep.subr.bf16.mxu1 %v1671_v18 }
 0x3ab   : > { %3569 = vmatpush3.bf16.msra.mxu1 %v1671_v18  ;;  %v1750_v18 = vmul.f32 0.0, %v4575_v54 }
 0x3ac   : > { %3570 = vmatprep.subr.bf16.mxu1 %v1670_v63 }
 0x3af   : > { %3571 = vmatpush3.bf16.msra.mxu1 %v1670_v63 }
 0x3b0   : > { %3572 = vmatprep.subr.bf16.mxu1 %v1669_v44 }
 0x3b3   : > { %3573 = vmatpush3.bf16.msra.mxu1 %v1669_v44 }
 0x3b4   : > { %3574 = vmatprep.subr.bf16.mxu1 %v1668_v0 }
 0x3b7   : > { %3575 = vmatpush3.bf16.msra.mxu1 %v1668_v0 }
 0x3b8   : > { %3576 = vmatprep.subr.bf16.mxu1 %v1667_v9 }
 0x3bb   : > { %3577 = vmatpush3.bf16.msra.mxu1 %v1667_v9  ;;  %v1753_v9 = vmul.f32 0.0, %v4581_v55 }
 0x3bc   : > { %3578 = vmatprep.subr.bf16.mxu1 %v1666_v56 }
 0x3bf   : > { %3579 = vmatpush3.bf16.msra.mxu1 %v1666_v56 }
 0x3c0   : > { %3388 = vmatprep.subr.bf16.mxu1 %v3790_v42 }
 0x3c2   : > { %3581 = vmatmul.mubr.bf16.vlgmr.msra.gmra.mxu1 %v4353_v33 }
 0x3c3   : > { %3584 = vmatprep.mubr.bf16.mxu1 %v4363_v49  ;;  %3389 = vmatpush3.bf16.msra.mxu1 %v3791_v30 }
 0x3c4   : > { %3390 = vmatprep.subr.bf16.mxu1 %v3792_v10  ;;  %v1751_v10 = vmul.f32 0.0, %v4588_v22 }
 0x3c7   : > { %3391 = vmatpush3.bf16.msra.mxu1 %v3793_v7 }
 0x3c8   : > { %3392 = vmatprep.subr.bf16.mxu1 %v3794_v23 }
 0x3ca   : > { %3585 = vmatmul.mubr.bf16.gmra.mxu1 %v4369_v61 }
 0x3cb   : > { %3588 = vmatprep.mubr.bf16.mxu1 %v4375_v11  ;;  %3393 = vmatpush3.bf16.msra.mxu1 %v3795_v34 }
 0x3cc   : > { %3394 = vmatprep.subr.bf16.mxu1 %v3796_v15  ;;  %v1756_v15 = vmul.f32 0.0, %v4592_v4 }
 0x3cf   : > { %3395 = vmatpush3.bf16.msra.mxu1 %v3797_v19 }
 0x3d0   : > { %3396 = vmatprep.subr.bf16.mxu1 %v3798_v12 }
 0x3d2   : > { %3589 = vmatmul.mubr.bf16.gmra.mxu1 %v4381_v31 }
 0x3d3   : > { %3592 = vmatprep.mubr.bf16.mxu1 %v4386_v45  ;;  %3397 = vmatpush3.bf16.msra.mxu1 %v3799_v25 }
 0x3d4   : > { %3398 = vmatprep.subr.bf16.mxu1 %v3800_v53  ;;  %v1754_v53 = vmul.f32 0.0, %v4599_v21 }
 0x3d7   : > { %3399 = vmatpush3.bf16.msra.mxu1 %v3801_v27 }
 0x3d8   : > { %3400 = vmatprep.subr.bf16.mxu1 %v3802_v36  ;;  %v3806_v36 = vld [vmem:[#allocation2] ss:$12 sps:$4 sm:$0xff]  }
 0x3da   : > { %3593 = vmatmul.mubr.bf16.gmra.mxu1 %v4391_v51 }
 0x3db   : > { %3401 = vmatpush3.bf16.msra.mxu1 %v3803_v13 }
 0x3dc   : > { %3402 = vmatprep.subr.bf16.mxu1 %v3804_v39 }
 0x3df   : > { %3403 = vmatpush3.bf16.msra.mxu1 %v3805_v24 }
 0x482   : > { %v3582_v58 = vpop.f32.mrf.mxu1 }
 0x483   : > { %v4658_v43 = vadd.f32 %v3582_v58, %v1748_v40  ;;  %v1757_v40 = vmul.f32 0.0, %v4605_v57 }
 0x484   : > { %v1796_v1 = vpop.f32.mrf.mxu1 }
 0x485   : > { %v3174_v26 = vpack.c.bf16 %v4658_v43, %v4658_v43  ;;  %v4663_v6 = vadd.f32 %v1796_v1, %v1746_v47 }
 0x486   : > { %v3583_v52 = vpop.f32.mrf.mxu1 }
 0x487   : > { %1925 = vst [vmem:[#allocation2 + $0x1c] sm:$0xf] %v3174_v26  ;;  %v3172_v17 = vpack.c.bf16 %v4663_v6, %v4663_v6  ;;  %v4668_v29 = vadd.f32 %v3583_v52, %v1749_v16  ;;  %v1755_v16 = vmul.f32 0.0, %v4612_v46 }
 0x488   : > { %v1799_v2 = vpop.f32.mrf.mxu1 }
 0x489   : > { %1923 = vst [vmem:[#allocation2 + $0x4] sm:$0xf] %v3172_v17  ;;  %v3175_v32 = vpack.c.bf16 %v4668_v29, %v4668_v29  ;;  %v4673_v20 = vadd.f32 %v1799_v2, %v1747_v35  ;;  %v1760_v2 = vmul.f32 0.0, %v4616_v50 }
 0x48a   : > { %v3586_v14 = vpop.f32.mrf.mxu1 }
 0x48b   : > { %1926 = vst [vmem:[#allocation2 + $0x28] sm:$0xf] %v3175_v32  ;;  %v3173_v59 = vpack.c.bf16 %v4673_v20, %v4673_v20  ;;  %v4678_v60 = vadd.f32 %v3586_v14, %v1752_v5 }
 0x48c   : > { %v1812_v63 = vpop.f32.mrf.mxu1 }
 0x48d   : > { %1924 = vst [vmem:[#allocation2 + $0x10] sm:$0xf] %v3173_v59  ;;  %v3178_v44 = vpack.c.bf16 %v4678_v60, %v4678_v60  ;;  %v4683_v0 = vadd.f32 %v1812_v63, %v1750_v18  ;;  %v1758_v59 = vmul.f32 0.0, %v4621_v48 }
 0x48e   : > { %v3587_v56 = vpop.f32.mrf.mxu1 }
 0x48f   : > { %1929 = vst [vmem:[#allocation2 + $0x4c] sm:$0xf] %v3178_v44  ;;  %v3176_v42 = vpack.c.bf16 %v4683_v0, %v4683_v0  ;;  %v4688_v30 = vadd.f32 %v3587_v56, %v1753_v9  ;;  %v1761_v9 = vmul.f32 0.0, %v4626_v41  ;;  %v3811_v56 = vld [vmem:[#allocation2 + $0x18] ss:$12 sps:$4 sm:$0xff]  }
 0x490   : > { %v1815_v7 = vpop.f32.mrf.mxu1 }
 0x491   : > { %1927 = vst [vmem:[#allocation2 + $0x34] sm:$0xf] %v3176_v42  ;;  %v3179_v23 = vpack.c.bf16 %v4688_v30, %v4688_v30  ;;  %v4693_v34 = vadd.f32 %v1815_v7, %v1751_v10 }
 0x492   : > { %v3590_v19 = vpop.f32.mrf.mxu1  ;;  %v3809_v47 = vld [vmem:[#allocation2 + $0x1c] ss:$12 sps:$4 sm:$0xff]  }
 0x493   : > { %1930 = vst [vmem:[#allocation2 + $0x58] sm:$0xf] %v3179_v23  ;;  %v3177_v12 = vpack.c.bf16 %v4693_v34, %v4693_v34  ;;  %v4698_v25 = vadd.f32 %v3590_v19, %v1756_v15  ;;  %v1759_v15 = vmul.f32 0.0, %v4630_v37 }
 0x494   : > { %v1828_v27 = vpop.f32.mrf.mxu1  ;;  %v3808_v13 = vld [vmem:[#allocation2 + $0x4] ss:$12 sps:$4 sm:$0xff]  }
 0x495   : > { %1928 = vst [vmem:[#allocation2 + $0x40] sm:$0xf] %v3177_v12  ;;  %v3182_v39 = vpack.c.bf16 %v4698_v25, %v4698_v25  ;;  %v4703_v24 = vadd.f32 %v1828_v27, %v1754_v53  ;;  %2555 = vmatprep.mubr.bf16.mxu1 %v3808_v13 }
 0x496   : > { %v3591_v58 = vpop.f32.mrf.mxu1  ;;  %2556 = vmatmul.mubr.bf16.vlgmr.msra.gmra.mxu1 %v3806_v36 }
 0x497   : > { %1933 = vst [vmem:[#allocation2 + $0x7c] sm:$0xf] %v3182_v39  ;;  %v3180_v1 = vpack.c.bf16 %v4703_v24, %v4703_v24  ;;  %v4708_v26 = vadd.f32 %v3591_v58, %v1757_v40  ;;  %2563 = vmatprep.mubr.bf16.mxu1 %v3809_v47  ;;  %v3814_v39 = vld [vmem:[#allocation2 + $0x30] ss:$12 sps:$4 sm:$0xff]  }
 0x498   : > { %v1831_v52 = vpop.f32.mrf.mxu1 }
 0x499   : > { %1931 = vst [vmem:[#allocation2 + $0x64] sm:$0xf] %v3180_v1  ;;  %v3183_v17 = vpack.c.bf16 %v4708_v26, %v4708_v26  ;;  %v4713_v35 = vadd.f32 %v1831_v52, %v1755_v16  ;;  %v1864_v58 = vpack.c.bf16 %v4708_v26, %v4698_v25  ;;  %v3817_v1 = vld [vmem:[#allocation2 + $0x48] ss:$12 sps:$4 sm:$0xff]   ;;  %v1862_v52 = vpack.c.bf16 %v4688_v30, %v4678_v60 }
 0x49a   : > { %v3594_v32 = vpop.f32.mrf.mxu1  ;;  %v3815_v40 = vld [vmem:[#allocation2 + $0x4c] ss:$12 sps:$4 sm:$0xff]  }
 0x49b   : > { %1934 = vst [vmem:[#allocation2 + $0x88] sm:$0xf] %v3183_v17  ;;  %v3181_v5 = vpack.c.bf16 %v4713_v35, %v4713_v35  ;;  %v4718_v14 = vadd.f32 %v3594_v32, %v1760_v2  ;;  %v1863_v47 = vpack.c.bf16 %v4713_v35, %v4703_v24  ;;  %v1861_v17 = vpack.c.bf16 %v4693_v34, %v4683_v0  ;;  %v3820_v2 = vld [vmem:[#allocation2 + $0x60] ss:$12 sps:$4 sm:$0xff]  }
 0x49c   : > { %v1844_v18 = vpop.f32.mrf.mxu1  ;;  %v3812_v10 = vld [vmem:[#allocation2 + $0x34] ss:$12 sps:$4 sm:$0xff]  }
 0x49d   : > { %1932 = vst [vmem:[#allocation2 + $0x70] sm:$0xf] %v3181_v5  ;;  %v3186_v63 = vpack.c.bf16 %v4718_v14, %v4718_v14  ;;  %v4723_v44 = vadd.f32 %v1844_v18, %v1758_v59  ;;  %v1860_v5 = vpack.c.bf16 %v4668_v29, %v4658_v43  ;;  %v1859_v59 = vpack.c.bf16 %v4673_v20, %v4663_v6  ;;  %v3823_v18 = vld [vmem:[#allocation2 + $0x78] ss:$12 sps:$4 sm:$0xff]  }
 0x49e   : > { %v3595_v42 = vpop.f32.mrf.mxu1  ;;  %2564 = vmatmul.mubr.bf16.gmra.mxu1 %v3811_v56 }
 0x49f   : > { %1937 = vst [vmem:[#allocation2 + $0xac] sm:$0xf] %v3186_v63  ;;  %v3184_v7 = vpack.c.bf16 %v4723_v44, %v4723_v44  ;;  %v4728_v23 = vadd.f32 %v3595_v42, %v1761_v9  ;;  %2571 = vmatprep.mubr.bf16.mxu1 %v3812_v10  ;;  %v3826_v9 = vld [vmem:[#allocation2 + $0x90] ss:$12 sps:$4 sm:$0xff]   ;;  %v3829_v42 = vld [vmem:[#allocation2 + $0xa8] ss:$12 sps:$4 sm:$0xff]  }
 0x4a0   : > { %v1847_v19 = vpop.f32.mrf.mxu1  ;;  %v3830_v10 = vld [vmem:[#allocation8 + $0xb8] sm:$0xff]  }
 0x4a1   : > { %1935 = vst [vmem:[#allocation2 + $0x94] sm:$0xf] %v3184_v7  ;;  %v3187_v12 = vpack.c.bf16 %v4728_v23, %v4728_v23  ;;  %v4733_v53 = vadd.f32 %v1847_v19, %v1759_v15  ;;  %v1866_v27 = vpack.c.bf16 %v4728_v23, %v4718_v14  ;;  %v1941_v7 = vmul.f32 0.0, %v4658_v43 }
 0x4a2   : > { %v3821_v32 = vld [vmem:[#allocation2 + $0x7c] ss:$12 sps:$4 sm:$0xff]  }
 0x4a3   : > { %1938 = vst [vmem:[#allocation2 + $0xb8] sm:$0xf] %v3187_v12  ;;  %v3185_v36 = vpack.c.bf16 %v4733_v53, %v4733_v53  ;;  %3596 = vmatprep.subr.bf16.mxu0 %v1866_v27  ;;  %v1865_v13 = vpack.c.bf16 %v4733_v53, %v4723_v44  ;;  %v1939_v12 = vmul.f32 0.0, %v4663_v6 }
 0x4a4   : > { %3597 = vmatpush3.bf16.msra.mxu0 %v1866_v27  ;;  %v3818_v16 = vld [vmem:[#allocation2 + $0x64] ss:$12 sps:$4 sm:$0xff]  }
 0x4a5   : > { %1936 = vst [vmem:[#allocation2 + $0xa0] sm:$0xf] %v3185_v36  ;;  %3598 = vmatprep.subr.bf16.mxu0 %v1865_v13 }
 0x4a6   : > { %2572 = vmatmul.mubr.bf16.gmra.mxu1 %v3814_v39  ;;  %v1942_v39 = vmul.f32 0.0, %v4668_v29 }
 0x4a7   : > { %2579 = vmatprep.mubr.bf16.mxu1 %v3815_v40 }
 0x4a8   : > { %3599 = vmatpush3.bf16.msra.mxu0 %v1865_v13 }
 0x4a9   : > { %3600 = vmatprep.subr.bf16.mxu0 %v1864_v58 }
 0x4aa   : > { %v3827_v56 = vld [vmem:[#allocation2 + $0xac] ss:$12 sps:$4 sm:$0xff]  }
 0x4ac   : > { %3601 = vmatpush3.bf16.msra.mxu0 %v1864_v58  ;;  %v3824_v63 = vld [vmem:[#allocation2 + $0x94] ss:$12 sps:$4 sm:$0xff]  }
 0x4ad   : > { %3602 = vmatprep.subr.bf16.mxu0 %v1863_v47 }
 0x4ae   : > { %2580 = vmatmul.mubr.bf16.gmra.mxu1 %v3817_v1 }
 0x4af   : > { %2587 = vmatprep.mubr.bf16.mxu1 %v3818_v16  ;;  %v1940_v16 = vmul.f32 0.0, %v4673_v20  ;;  %v1946_v20 = vmul.f32 0.0, %v4688_v30 }
 0x4b0   : > { %3603 = vmatpush3.bf16.msra.mxu0 %v1863_v47 }
 0x4b1   : > { %3604 = vmatprep.subr.bf16.mxu0 %v1862_v52 }
 0x4b4   : > { %3605 = vmatpush3.bf16.msra.mxu0 %v1862_v52 }
 0x4b5   : > { %3606 = vmatprep.subr.bf16.mxu0 %v1861_v17 }
 0x4b6   : > { %2588 = vmatmul.mubr.bf16.gmra.mxu1 %v3820_v2 }
 0x4b7   : > { %2595 = vmatprep.mubr.bf16.mxu1 %v3821_v32 }
 0x4b8   : > { %3607 = vmatpush3.bf16.msra.mxu0 %v1861_v17  ;;  %v1945_v17 = vmul.f32 0.0, %v4678_v60 }
 0x4b9   : > { %3608 = vmatprep.subr.bf16.mxu0 %v1860_v5 }
 0x4bc   : > { %3609 = vmatpush3.bf16.msra.mxu0 %v1860_v5 }
 0x4bd   : > { %3610 = vmatprep.subr.bf16.mxu0 %v1859_v59 }
 0x4be   : > { %2596 = vmatmul.mubr.bf16.gmra.mxu1 %v3823_v18 }
 0x4bf   : > { %2603 = vmatprep.mubr.bf16.mxu1 %v3824_v63 }
 0x4c0   : > { %3611 = vmatpush3.bf16.msra.mxu0 %v1859_v59  ;;  %v1943_v59 = vmul.f32 0.0, %v4683_v0 }
 0x4c1   : > { %3628 = vmatprep.subr.bf16.mxu0 %v3830_v10 }
 0x4c3   : > { %3613 = vmatmul.mubr.bf16.vlgmr.msra.gmra.mxu0 %v4353_v33  ;;  %v3831_v33 = vld [vmem:[#allocation8 + $0xb0] sm:$0xff]  }
 0x4c4   : > { %3616 = vmatprep.mubr.bf16.mxu0 %v4363_v49  ;;  %3629 = vmatpush3.bf16.msra.mxu0 %v3830_v10  ;;  %v3832_v49 = vld [vmem:[#allocation8 + $0xa8] sm:$0xff]  }
 0x4c5   : > { %3630 = vmatprep.subr.bf16.mxu0 %v3831_v33 }
 0x4c6   : > { %2604 = vmatmul.mubr.bf16.gmra.mxu1 %v3826_v9 }
 0x4c7   : > { %2611 = vmatprep.mubr.bf16.mxu1 %v3827_v56 }
 0x4c8   : > { %3631 = vmatpush3.bf16.msra.mxu0 %v3831_v33  ;;  %v1944_v33 = vmul.f32 0.0, %v4693_v34 }
 0x4c9   : > { %3632 = vmatprep.subr.bf16.mxu0 %v3832_v49 }
 0x4cb   : > { %3617 = vmatmul.mubr.bf16.gmra.mxu0 %v4369_v61  ;;  %v3833_v61 = vld [vmem:[#allocation8 + $0xa0] sm:$0xff]  }
 0x4cc   : > { %3620 = vmatprep.mubr.bf16.mxu0 %v4375_v11  ;;  %3633 = vmatpush3.bf16.msra.mxu0 %v3832_v49  ;;  %v3834_v11 = vld [vmem:[#allocation8 + $0x98] sm:$0xff]  }
 0x4cd   : > { %3634 = vmatprep.subr.bf16.mxu0 %v3833_v61 }
 0x4ce   : > { %2612 = vmatmul.mubr.bf16.gmra.mxu1 %v3829_v42 }
 0x4d0   : > { %3635 = vmatpush3.bf16.msra.mxu0 %v3833_v61 }
 0x4d1   : > { %3636 = vmatprep.subr.bf16.mxu0 %v3834_v11 }
 0x4d3   : > { %3621 = vmatmul.mubr.bf16.gmra.mxu0 %v4381_v31  ;;  %v3835_v31 = vld [vmem:[#allocation8 + $0x90] sm:$0xff]  }
 0x4d4   : > { %3624 = vmatprep.mubr.bf16.mxu0 %v4386_v45  ;;  %3637 = vmatpush3.bf16.msra.mxu0 %v3834_v11  ;;  %v3836_v45 = vld [vmem:[#allocation8 + $0x88] sm:$0xff]  }
 0x4d5   : > { %3638 = vmatprep.subr.bf16.mxu0 %v3835_v31 }
 0x4d8   : > { %3639 = vmatpush3.bf16.msra.mxu0 %v3835_v31  ;;  %v1949_v31 = vmul.f32 0.0, %v4698_v25 }
 0x4d9   : > { %3640 = vmatprep.subr.bf16.mxu0 %v3836_v45 }
 0x4db   : > { %3625 = vmatmul.mubr.bf16.gmra.mxu0 %v4391_v51  ;;  %v3837_v51 = vld [vmem:[#allocation8 + $0x80] sm:$0xff]  }
 0x4dc   : > { %3641 = vmatpush3.bf16.msra.mxu0 %v3836_v45 }
 0x4dd   : > { %3642 = vmatprep.subr.bf16.mxu0 %v3837_v51 }
 0x4e0   : > { %3643 = vmatpush3.bf16.msra.mxu0 %v3837_v51 }
 0x583   : > { %v3614_v15 = vpop.f32.mrf.mxu0 }
 0x584   : > { %v1998_v19 = vadd.f32 %v3614_v15, %v1941_v7  ;;  %v1947_v15 = vmul.f32 0.0, %v4703_v24 }
 0x585   : > { %v1989_v27 = vpop.f32.mrf.mxu0 }
 0x586   : > { %v2054_v36 = vmul.f32 2.0, %v1998_v19  ;;  %v1990_v13 = vadd.f32 %v1989_v27, %v1939_v12 }
 0x587   : > { %v3615_v40 = vpop.f32.mrf.mxu0 }
 0x588   : > { %v2070_v58 = vsub.f32 %v2054_v36, %v4548_v3  ;;  %v2052_v47 = vmul.f32 2.0, %v1990_v13  ;;  %v2001_v1 = vadd.f32 %v3615_v40, %v1942_v39  ;;  %v1950_v36 = vmul.f32 0.0, %v4708_v26 }
 0x589   : > { %v1992_v52 = vpop.f32.mrf.mxu0 }
 0x58a   : > { %v3190_v43 = vpack.c.bf16 %v2070_v58, %v2070_v58  ;;  %v2068_v2 = vsub.f32 %v2052_v47, %v4555_v38  ;;  %v2055_v32 = vmul.f32 2.0, %v2001_v1  ;;  %v1993_v6 = vadd.f32 %v1992_v52, %v1940_v16 }
 0x58b   : > { %v3618_v5 = vpop.f32.mrf.mxu0  ;;  %v1948_v58 = vmul.f32 0.0, %v4713_v35  ;;  %v1953_v52 = vmul.f32 0.0, %v4718_v14  ;;  %v1951_v35 = vmul.f32 0.0, %v4723_v44 }
 0x58c   : > { %2150 = vst [vmem:[#allocation2 + $0x20] sm:$0xf] %v3190_v43  ;;  %v3188_v29 = vpack.c.bf16 %v2068_v2, %v2068_v2  ;;  %v2071_v18 = vsub.f32 %v2055_v32, %v4561_v8  ;;  %v2053_v3 = vmul.f32 2.0, %v1993_v6  ;;  %v2014_v63 = vadd.f32 %v3618_v5, %v1945_v17 }
 0x58d   : > { %v2005_v9 = vpop.f32.mrf.mxu0 }
 0x58e   : > { %2148 = vst [vmem:[#allocation2 + $0x8] sm:$0xf] %v3188_v29  ;;  %v3191_v56 = vpack.c.bf16 %v2071_v18, %v2071_v18  ;;  %v2069_v60 = vsub.f32 %v2053_v3, %v4566_v28  ;;  %v2058_v42 = vmul.f32 2.0, %v2014_v63  ;;  %v2006_v38 = vadd.f32 %v2005_v9, %v1943_v59 }
 0x58f   : > { %v3619_v10 = vpop.f32.mrf.mxu0  ;;  %v1954_v18 = vmul.f32 0.0, %v4728_v23 }
 0x590   : > { %2151 = vst [vmem:[#allocation2 + $0x2c] sm:$0xf] %v3191_v56  ;;  %v3189_v0 = vpack.c.bf16 %v2069_v60, %v2069_v60  ;;  %v2074_v49 = vsub.f32 %v2058_v42, %v4570_v62  ;;  %v2056_v61 = vmul.f32 2.0, %v2006_v38  ;;  %v2017_v8 = vadd.f32 %v3619_v10, %v1946_v20 }
 0x591   : > { %v2008_v11 = vpop.f32.mrf.mxu0  ;;  %v1952_v56 = vmul.f32 0.0, %v4733_v53 }
 0x592   : > { %2149 = vst [vmem:[#allocation2 + $0x14] sm:$0xf] %v3189_v0  ;;  %v3194_v30 = vpack.c.bf16 %v2074_v49, %v2074_v49  ;;  %v2072_v45 = vsub.f32 %v2056_v61, %v4575_v54  ;;  %v2059_v51 = vmul.f32 2.0, %v2017_v8  ;;  %v2009_v28 = vadd.f32 %v2008_v11, %v1944_v33 }
 0x593   : > { %v3622_v7 = vpop.f32.mrf.mxu0 }
 0x594   : > { %2154 = vst [vmem:[#allocation2 + $0x50] sm:$0xf] %v3194_v30  ;;  %v3192_v34 = vpack.c.bf16 %v2072_v45, %v2072_v45  ;;  %v2075_v19 = vsub.f32 %v2059_v51, %v4581_v55  ;;  %v2057_v12 = vmul.f32 2.0, %v2009_v28  ;;  %v2030_v62 = vadd.f32 %v3622_v7, %v1949_v31  ;;  %v3404_v28 = vpop.f32.mrf.mxu1 }
 0x595   : > { %v2021_v27 = vpop.f32.mrf.mxu0 }
 0x596   : > { %2152 = vst [vmem:[#allocation2 + $0x38] sm:$0xf] %v3192_v34  ;;  %v3195_v25 = vpack.c.bf16 %v2075_v19, %v2075_v19  ;;  %v2073_v13 = vsub.f32 %v2057_v12, %v4588_v22  ;;  %v2062_v39 = vmul.f32 2.0, %v2030_v62  ;;  %v2022_v54 = vadd.f32 %v2021_v27, %v1947_v15  ;;  %v3405_v7 = vpop.f32.mrf.mxu1 }
 0x597   : > { %v3623_v40 = vpop.f32.mrf.mxu0  ;;  %v3839_v32 = vld [vmem:[#allocation2 + $0x20] ss:$12 sps:$4 sm:$0xff]  }
 0x598   : > { %2155 = vst [vmem:[#allocation2 + $0x5c] sm:$0xf] %v3195_v25  ;;  %v3193_v24 = vpack.c.bf16 %v2073_v13, %v2073_v13  ;;  %v2078_v47 = vsub.f32 %v2062_v39, %v4592_v4  ;;  %v2060_v1 = vmul.f32 2.0, %v2022_v54  ;;  %v2033_v55 = vadd.f32 %v3623_v40, %v1950_v36 }
 0x599   : > { %v2024_v16 = vpop.f32.mrf.mxu0  ;;  %v3838_v17 = vld [vmem:[#allocation2 + $0x8] ss:$12 sps:$4 sm:$0xff]  }
 0x59a   : > { %2153 = vst [vmem:[#allocation2 + $0x44] sm:$0xf] %v3193_v24  ;;  %v3198_v26 = vpack.c.bf16 %v2078_v47, %v2078_v47  ;;  %v2076_v43 = vsub.f32 %v2060_v1, %v4599_v21  ;;  %v2063_v22 = vmul.f32 2.0, %v2033_v55  ;;  %v2025_v2 = vadd.f32 %v2024_v16, %v1948_v58  ;;  %3644 = vmatprep.mubr.bf16.mxu0 %v3838_v17 }
 0x59b   : > { %v3626_v6 = vpop.f32.mrf.mxu0  ;;  %3645 = vmatmul.mubr.bf16.vlgmr.msra.gmra.mxu0 %v3839_v32  ;;  %v4803_v32 = vld [vmem:[%s4907_s7] ss:$0 sm:$0xff] }
 0x59c   : > { %2158 = vst [vmem:[#allocation2 + $0x80] sm:$0xf] %v3198_v26  ;;  %v3196_v5 = vpack.c.bf16 %v2076_v43, %v2076_v43  ;;  %v2079_v4 = vsub.f32 %v2063_v22, %v4605_v57  ;;  %v2061_v59 = vmul.f32 2.0, %v2025_v2  ;;  %v2046_v29 = vadd.f32 %v3626_v6, %v1953_v52 }
 0x59d   : > { %v2037_v14 = vpop.f32.mrf.mxu0  ;;  %v3406_v2 = vadd.f32 %v3405_v7, %v3404_v28 }
 0x59e   : > { %2156 = vst [vmem:[#allocation2 + $0x68] sm:$0xf] %v3196_v5  ;;  %v3199_v3 = vpack.c.bf16 %v2079_v4, %v2079_v4  ;;  %v2077_v21 = vsub.f32 %v2061_v59, %v4612_v46  ;;  %v2066_v63 = vmul.f32 2.0, %v2046_v29  ;;  %v2038_v9 = vadd.f32 %v2037_v14, %v1951_v35 }
 0x59f   : > { %v3627_v20 = vpop.f32.mrf.mxu0  ;;  %v3841_v46 = vld [vmem:[#allocation2 + $0x50] ss:$12 sps:$4 sm:$0xff]   ;;  %v2558_v14 = vadd.f32 %v3406_v2, %v4803_v32 }
 0x5a0   : > { %2159 = vst [vmem:[#allocation2 + $0x8c] sm:$0xf] %v3199_v3  ;;  %v3197_v44 = vpack.c.bf16 %v2077_v21, %v2077_v21  ;;  %v2082_v60 = vsub.f32 %v2066_v63, %v4616_v50  ;;  %v2064_v57 = vmul.f32 2.0, %v2038_v9  ;;  %v2049_v42 = vadd.f32 %v3627_v20, %v1954_v18 }
 0x5a1   : > { %v2040_v38 = vpop.f32.mrf.mxu0  ;;  %v3840_v10 = vld [vmem:[#allocation2 + $0x38] ss:$12 sps:$4 sm:$0xff]  }
 0x5a2   : > { %2157 = vst [vmem:[#allocation2 + $0x74] sm:$0xf] %v3197_v44  ;;  %v3202_v33 = vpack.c.bf16 %v2082_v60, %v2082_v60  ;;  %v2080_v23 = vsub.f32 %v2064_v57, %v4621_v48  ;;  %v2067_v0 = vmul.f32 2.0, %v2049_v42  ;;  %v2041_v49 = vadd.f32 %v2040_v38, %v1952_v56  ;;  %3648 = vmatprep.mubr.bf16.mxu0 %v3840_v10 }
 0x5a3   : > { %3649 = vmatmul.mubr.bf16.gmra.mxu0 %v3841_v46 }
 0x5a4   : > { %2162 = vst [vmem:[#allocation2 + $0xb0] sm:$0xf] %v3202_v33  ;;  %v3200_v61 = vpack.c.bf16 %v2080_v23, %v2080_v23  ;;  %v2083_v53 = vsub.f32 %v2067_v0, %v4626_v41  ;;  %v2065_v8 = vmul.f32 2.0, %v2041_v49  ;;  %v3407_v41 = vpop.f32.mrf.mxu1 }
 0x5a6   : > { %2160 = vst [vmem:[#allocation2 + $0x98] sm:$0xf] %v3200_v61  ;;  %v3203_v50 = vpack.c.bf16 %v2083_v53, %v2083_v53  ;;  %v2081_v11 = vsub.f32 %v2065_v8, %v4630_v37  ;;  %v3408_v15 = vpop.f32.mrf.mxu1 }
 0x5a7   : > { %v3843_v45 = vld [vmem:[#allocation2 + $0x80] ss:$12 sps:$4 sm:$0xff]   ;;  %v3409_v59 = vadd.f32 %v3408_v15, %v3407_v41 }
 0x5a8   : > { %2163 = vst [vmem:[#allocation2 + $0xbc] sm:$0xf] %v3203_v50  ;;  %v3201_v31 = vpack.c.bf16 %v2081_v11, %v2081_v11  ;;  %v3410_v34 = vpop.f32.mrf.mxu1 }
 0x5a9   : > { %v3842_v30 = vld [vmem:[#allocation2 + $0x68] ss:$12 sps:$4 sm:$0xff]   ;;  %v2561_v42 = vadd.f32 %v3409_v59, %v4803_v32 }
 0x5aa   : > { %2161 = vst [vmem:[#allocation2 + $0xa4] sm:$0xf] %v3201_v31  ;;  %3652 = vmatprep.mubr.bf16.mxu0 %v3842_v30  ;;  %v3411_v19 = vpop.f32.mrf.mxu1 }
 0x5ab   : > { %3653 = vmatmul.mubr.bf16.gmra.mxu0 %v3843_v45  ;;  %v3412_v43 = vadd.f32 %v3411_v19, %v3410_v34 }
 0x5ac   : > { %v3413_v12 = vpop.f32.mrf.mxu1 }
 0x5ad   : > { %v2566_v35 = vadd.f32 %v3412_v43, %v4803_v32 }
 0x5ae   : > { %v3414_v62 = vpop.f32.mrf.mxu1 }
 0x5af   : > { %v3845_v51 = vld [vmem:[#allocation2 + $0xb0] ss:$12 sps:$4 sm:$0xff]   ;;  %v3415_v6 = vadd.f32 %v3414_v62, %v3413_v12 }
 0x5b0   : > { %v3416_v37 = vpop.f32.mrf.mxu1 }
 0x5b1   : > { %v3844_v48 = vld [vmem:[#allocation2 + $0x98] ss:$12 sps:$4 sm:$0xff]   ;;  %v2569_v9 = vadd.f32 %v3415_v6, %v4803_v32 }
 0x5b2   : > { %3656 = vmatprep.mubr.bf16.mxu0 %v3844_v48  ;;  %v3417_v27 = vpop.f32.mrf.mxu1 }
 0x5b3   : > { %3657 = vmatmul.mubr.bf16.gmra.mxu0 %v3845_v51  ;;  %v3418_v44 = vadd.f32 %v3417_v27, %v3416_v37 }
 0x5b4   : > { %v3419_v36 = vpop.f32.mrf.mxu1 }
 0x5b5   : > { %v2574_v50 = vadd.f32 %v3418_v44, %v4803_v32 }
 0x5b6   : > { %v3420_v25 = vpop.f32.mrf.mxu1 }
 0x5b7   : > { %v3421_v61 = vadd.f32 %v3420_v25, %v3419_v36 }
 0x5b8   : > { %v3422_v13 = vpop.f32.mrf.mxu1 }
 0x5b9   : > { %v2577_v34 = vadd.f32 %v3421_v61, %v4803_v32 }
 0x5ba   : > { %v3423_v39 = vpop.f32.mrf.mxu1 }
 0x5bb   : > { %v3424_v3 = vadd.f32 %v3423_v39, %v3422_v13 }
 0x5bc   : > { %v3425_v54 = vpop.f32.mrf.mxu1 }
 0x5bd   : > { %v2582_v0 = vadd.f32 %v3424_v3, %v4803_v32 }
 0x5be   : > { %v3426_v40 = vpop.f32.mrf.mxu1 }
 0x5bf   : > { %v3427_v10 = vadd.f32 %v3426_v40, %v3425_v54 }
 0x5c0   : > { %v3428_v58 = vpop.f32.mrf.mxu1 }
 0x5c1   : > { %v2585_v48 = vadd.f32 %v3427_v10, %v4803_v32 }
 0x5c2   : > { %v3429_v24 = vpop.f32.mrf.mxu1 }
 0x5c3   : > { %v3430_v7 = vadd.f32 %v3429_v24, %v3428_v58 }
 0x5c4   : > { %v4792_v47 = vpop.f32.mrf.mxu1 }
 0x5c5   : > { %v2590_v40 = vadd.f32 %v3430_v7, %v4803_v32 }
 0x5c6   : > { %v4794_v1 = vpop.f32.mrf.mxu1 }
 0x5c7   : > { %v3433_v13 = vadd.f32 %v4794_v1, %v4792_v47 }
 0x5c8   : > { %v3434_v55 = vpop.f32.mrf.mxu1 }
 0x5c9   : > { %v2593_v6 = vadd.f32 %v3433_v13, %v4803_v32 }
 0x5ca   : > { %v3435_v16 = vpop.f32.mrf.mxu1 }
 0x5cb   : > { %v3436_v31 = vadd.f32 %v3435_v16, %v3434_v55 }
 0x5cc   : > { %v3437_v52 = vpop.f32.mrf.mxu1 }
 0x5cd   : > { %v2598_v27 = vadd.f32 %v3436_v31, %v4803_v32 }
 0x5ce   : > { %v3438_v17 = vpop.f32.mrf.mxu1 }
 0x5cf   : > { %v3439_v12 = vadd.f32 %v3438_v17, %v3437_v52 }
 0x5d0   : > { %v4796_v26 = vpop.f32.mrf.mxu1 }
 0x5d1   : > { %v2601_v52 = vadd.f32 %v3439_v12, %v4803_v32 }
 0x5d2   : > { %v4798_v22 = vpop.f32.mrf.mxu1 }
 0x5d3   : > { %v3442_v2 = vadd.f32 %v4798_v22, %v4796_v26 }
 0x5d4   : > { %v4807_v5 = vpop.f32.mrf.mxu1 }
 0x5d6   : > { %v4811_v20 = vpop.f32.mrf.mxu1 }
 0x5d7   : > { %v3445_v3 = vadd.f32 %v4811_v20, %v4807_v5 }
 0x5d8   : > { %v3446_v49 = vpop.f32.mrf.mxu1 }
 0x5d9   : > { %v2609_v20 = vadd.f32 %v3445_v3, %v4803_v32 }
 0x5da   : > { %v3447_v51 = vpop.f32.mrf.mxu1 }
 0x5db   : > { %v3448_v24 = vadd.f32 %v3447_v51, %v3446_v49 }
 0x5dc   : > { %v3449_v36 = vpop.f32.mrf.mxu1 }
 0x5de   : > { %v3450_v17 = vpop.f32.mrf.mxu1 }
 0x65b   : > { %v3646_v4 = vpop.f32.mrf.mxu0 }
 0x65c   : > { %v2663_v29 = vadd.f32 %v3646_v4, %v2566_v35  ;;  %v3451_v4 = vadd.f32 %v3450_v17, %v3449_v36 }
 0x65d   : > { %v2654_v18 = vpop.f32.mrf.mxu0 }
 0x65e   : > { %v2719_v21 = vmax.f32 %v2663_v29, 0.0  ;;  %v2655_v63 = vadd.f32 %v2654_v18, %v2558_v14  ;;  %v2614_v14 = vadd.f32 %v3448_v24, %v4803_v32  ;;  %v2617_v44 = vadd.f32 %v3451_v4, %v4803_v32 }
 0x65f   : > { %v3647_v56 = vpop.f32.mrf.mxu0 }
 0x660   : > { %2735 = vst [vmem:[%s4813_s25 + $0x10] sm:$0xff] %v2719_v21  ;;  %v2717_v60 = vmax.f32 %v2655_v63, 0.0  ;;  %v2666_v57 = vadd.f32 %v3647_v56, %v2569_v9  ;;  %v2606_v21 = vadd.f32 %v3442_v2, %v4803_v32 }
 0x661   : > { %v2657_v38 = vpop.f32.mrf.mxu0 }
 0x662   : > { %2733 = vst [vmem:[%s4813_s25] sm:$0xff] %v2717_v60  ;;  %v2720_v33 = vmax.f32 %v2666_v57, 0.0  ;;  %v2658_v23 = vadd.f32 %v2657_v38, %v2561_v42 }
 0x663   : > { %v3650_v46 = vpop.f32.mrf.mxu0 }
 0x664   : > { %2736 = vst [vmem:[%s4813_s25 + $0x18] sm:$0xff] %v2720_v33  ;;  %v2718_v53 = vmax.f32 %v2658_v23, 0.0  ;;  %v2679_v8 = vadd.f32 %v3650_v46, %v2582_v0 }
 0x665   : > { %v2670_v11 = vpop.f32.mrf.mxu0 }
 0x666   : > { %2734 = vst [vmem:[%s4813_s25 + $0x8] sm:$0xff] %v2718_v53  ;;  %v2723_v30 = vmax.f32 %v2679_v8, 0.0  ;;  %v2671_v45 = vadd.f32 %v2670_v11, %v2574_v50 }
 0x667   : > { %v3651_v28 = vpop.f32.mrf.mxu0 }
 0x668   : > { %2739 = vst [vmem:[%s4813_s25 + $0x30] sm:$0xff] %v2723_v30  ;;  %v2721_v41 = vmax.f32 %v2671_v45, 0.0  ;;  %v2682_v15 = vadd.f32 %v3651_v28, %v2585_v48 }
 0x669   : > { %v2673_v19 = vpop.f32.mrf.mxu0 }
 0x66a   : > { %2737 = vst [vmem:[%s4813_s25 + $0x20] sm:$0xff] %v2721_v41  ;;  %v2724_v62 = vmax.f32 %v2682_v15, 0.0  ;;  %v2674_v37 = vadd.f32 %v2673_v19, %v2577_v34 }
 0x66b   : > { %v3654_v25 = vpop.f32.mrf.mxu0 }
 0x66c   : > { %2740 = vst [vmem:[%s4813_s25 + $0x38] sm:$0xff] %v2724_v62  ;;  %v2722_v39 = vmax.f32 %v2674_v37, 0.0  ;;  %v2695_v54 = vadd.f32 %v3654_v25, %v2598_v27 }
 0x66d   : > { %v2686_v58 = vpop.f32.mrf.mxu0 }
 0x66e   : > { %2738 = vst [vmem:[%s4813_s25 + $0x28] sm:$0xff] %v2722_v39  ;;  %v2727_v55 = vmax.f32 %v2695_v54, 0.0  ;;  %v2687_v16 = vadd.f32 %v2686_v58, %v2590_v40 }
 0x66f   : > { %v3655_v43 = vpop.f32.mrf.mxu0 }
 0x670   : > { %2743 = vst [vmem:[%s4813_s25 + $0x50] sm:$0xff] %v2727_v55  ;;  %v2725_v47 = vmax.f32 %v2687_v16, 0.0  ;;  %v2698_v1 = vadd.f32 %v3655_v43, %v2601_v52 }
 0x671   : > { %v2689_v35 = vpop.f32.mrf.mxu0 }
 0x672   : > { %2741 = vst [vmem:[%s4813_s25 + $0x40] sm:$0xff] %v2725_v47  ;;  %v2728_v59 = vmax.f32 %v2698_v1, 0.0  ;;  %v2690_v29 = vadd.f32 %v2689_v35, %v2593_v6 }
 0x673   : > { %v3658_v18 = vpop.f32.mrf.mxu0 }
 0x674   : > { %2744 = vst [vmem:[%s4813_s25 + $0x58] sm:$0xff] %v2728_v59  ;;  %v2726_v26 = vmax.f32 %v2690_v29, 0.0  ;;  %v2711_v22 = vadd.f32 %v3658_v18, %v2614_v14 }
 0x675   : > { %v2702_v63 = vpop.f32.mrf.mxu0 }
 0x676   : > { %2742 = vst [vmem:[%s4813_s25 + $0x48] sm:$0xff] %v2726_v26  ;;  %v2731_v9 = vmax.f32 %v2711_v22, 0.0  ;;  %v2703_v56 = vadd.f32 %v2702_v63, %v2606_v21 }
 0x677   : > { %v3659_v60 = vpop.f32.mrf.mxu0 }
 0x678   : > { %2747 = vst [vmem:[%s4813_s25 + $0x70] sm:$0xff] %v2731_v9  ;;  %v2729_v57 = vmax.f32 %v2703_v56, 0.0  ;;  %v2714_v5 = vadd.f32 %v3659_v60, %v2617_v44 }
 0x679   : > { %v2705_v42 = vpop.f32.mrf.mxu0 }
 0x67a   : > { %2745 = vst [vmem:[%s4813_s25 + $0x60] sm:$0xff] %v2729_v57  ;;  %v2732_v38 = vmax.f32 %v2714_v5, 0.0  ;;  %v2706_v10 = vadd.f32 %v2705_v42, %v2609_v20 }
 0x67c   : > { %2748 = vst [vmem:[%s4813_s25 + $0x78] sm:$0xff] %v2732_v38  ;;  %v2730_v33 = vmax.f32 %v2706_v10, 0.0 }
 0x67e   : > { %2746 = vst [vmem:[%s4813_s25 + $0x68] sm:$0xff] %v2730_v33 }
 0x67f   : > { %3951 = shalt.err (!%p3948_p11)
}
 0x680   : > { %s3952_s22 = scalar_lea.hbm %s4853_s19, 2048  ;;  %s3956_s20 = scalar_lea.hbm %s4908_s8, 4096 }
 0x681   : > { %p3953_p9 = scmp.ne.s32.totalorder %s4853_s19, %s3952_s22  ;;  %p3957_p6 = scmp.lt.s32.totalorder %s4853_s19, %s4908_s8 }
 0x682   : > { %p3958_p8 = scmp.lt.s32.totalorder %s3956_s20, %s3952_s22 }
 0x683   : > { %p3954_p1 = pnand %p3953_p9, %p4931_p7 }
 0x684   : > { %p3959_p5 = por %p3958_p8, %p3957_p6 }
 0x685   : > { %p3955_p4 = pneg %p3954_p1 }
 0x687   : > { %p3960_p2 = pnand %p3959_p5, %p3955_p4 }
 0x689   : > { %3963 = shalt.err (!%p3960_p2)
}
 0x68a   : > { %s4015_s14 = smov 128   ;;  %s4016_s26 = smov 8  }
 0x68b   : > { %3670 = dma.vmem_to_hbm [thread:$0]  (%p4931_p7), %s4855_s11, 2048, %s4853_s19, %s2750_s18, %s4015_s14, %s4015_s14, %s4016_s26  }
 0x68c PF: > { %s2778_s9 = sand.u32 1, %s3994_s27   ;;  %p4932_p12 = scmp.ne.s32.totalorder %s4918_s12, 0 }
 0x68d   : > { %p4933_p13 = scmp.ge.s32.totalorder %s4006_s30, 2  ;;  %s2779_s21 = scalar_lea.sflag [#allocation5], %s2778_s9 }
 0x68f   : > { %p3684_p0 = pnand %p4933_p13, %p4932_p12 }
 0x691   : > { %p3685_p10 = pneg %p3684_p0 }
 0x693   : > { %3989 = dma.done.wait (%p3685_p10), %s2779_s21, 2048  }
 0x694   : > { %3991 = vsyncadd (%p3685_p10), %s2779_s21, 4294965248  ;;  %p22_p3 = scmp.ge.s32.totalorder %s4140_s10, 4   ;;  %s4934_s27 = smov %s3998_s28 }
 0x695   : > { %s4935_s28 = smov %s4002_s29  ;;  %s4936_s29 = smov %s4156_s17 }
 0x696   : > { %s4937_s30 = smov %s4140_s10  ;;  %24 = sbr.rel (!%p22_p3) target bundleno = 9 (0x9), region = 114 }
 0x69b   :  { %2784 = vsyncpa [#allocation4], 1 }
 0x69c   :  { %2786 = vsyncpa [#allocation4 + $0x1], 1 }
 0x69d   :  { %2787 = vsyncpa [#allocation7], 1 }
 0x69e   :  { %2788 = vsyncpa [#allocation5], 1 }
 0x69f   :  { %2790 = vsyncpa [#allocation5 + $0x1], 1 }

</bundles_post_ra>
